<compile_context>
chip_gen: v6e
topology: v6e:2x2x1
jax: 0.10.0
libtpu: 0.0.40
codegen_flags: <defaults>
</compile_context>

<pallas_src>
import functools

import numpy as np
import jax
import jax.numpy as jnp
from jax.experimental import pallas as pl
from jax.experimental.pallas import tpu as pltpu

KERNEL_SIZE = 8
PAD = KERNEL_SIZE - 2          # = 6, as in the PyTorch module
LANE = 128                     # TPU lane tile width

# db4 reconstruction low-pass filter (pywt.Wavelet('db4').filter_bank[2]),
# hard-coded so the script needs no pywt / file I/O.
_DB4_REC_LO = np.array(
    [0.23037781330885523, 0.7148465705525415, 0.6308807679295904,
     -0.02798376941698385, -0.18703481171888114, 0.030841381835986965,
     0.032883011666982945, -0.010597401784997278], dtype=np.float32)


def get_cmf_1d(w_low: np.ndarray) -> np.ndarray:
    """High-pass (conjugate mirror) filter: flip(w) * (-1)**k  (matches get_cmf)."""
    k = np.arange(w_low.shape[0])
    return (w_low[::-1] * ((-1.0) ** k)).astype(np.float32)


def _conv_matrix(w: np.ndarray, in_len: int, out_len: int, offset: int) -> np.ndarray:
    """M such that (x @ M)[j] == sum_k w[k] * x[2*j + k - offset]
    (stride-2 cross-correlation; out-of-range taps read zero, i.e. the
    zero-padding is folded into the matrix)."""
    m = np.zeros((in_len, out_len), dtype=np.float32)
    for j in range(out_len):
        for k in range(w.shape[0]):
            r = 2 * j + k - offset
            if 0 <= r < in_len:
                m[r, j] = w[k]
    return m


# ------------------------------ Pallas kernel ------------------------------
def _wnblock_kernel(x_ref, mh_ref, p_ref, mvt_ref,
                    low_ref, high_ref, ll_ref, lh_ref, hl_ref, hh_ref,
                    *, cb, h, wo, wf, ho, hop):
    """CB channel planes per grid step.

    x_ref   : (CB*H, W)           CB input planes stacked along rows
    mh_ref  : (W, 4*128)          horizontal conv matrices
                                  [lo compact | hi compact | lo padded | hi padded]
    p_ref   : (HM, H)             0/1 row-placement (H zero-padding of level 1)
    mvt_ref : (HOP+HO, H)         vertical conv matrices (transposed), high block
                                  starting at the 8-aligned row HOP
    low/high_ref : (CB, HM, WO)   level-1 outputs
    ll/lh/hl/hh_ref : (CB, HO, WF) level-2 outputs
    """
    # Horizontal db4 pass for all CB planes in one MXU matmul (M = CB*H);
    # tanh on the EUP.  tanh(0) = 0, so the folded zero columns stay zero.
    y = jnp.tanh(jnp.dot(x_ref[...], mh_ref[...],
                         preferred_element_type=jnp.float32))         # (CB*H, 512)

    p = p_ref[...]          # (HM, H)
    mvt = mvt_ref[...]      # (HOP+HO, H)

    # Per-plane placement + vertical pass; static unroll with static,
    # sublane-aligned slices consumes y chunk-by-chunk.
    for c in range(cb):
        yc = y[c * h:(c + 1) * h, :]                                   # (H, 512)
        y_compact = yc[:, :2 * LANE]   # values at lanes [0,wo) / [128,128+wo)
        y_padded = yc[:, 2 * LANE:]    # values at lanes [PAD,..) / [128+PAD,..)

        # Row placement: shift the H real rows to rows [PAD, PAD+H) of the
        # (H+2*PAD)-row level-1 outputs; padded rows are exactly zero.
        yp = jnp.dot(p, y_compact, preferred_element_type=jnp.float32)          # (HM, 256)

        # Vertical db4 pass on both level-1 outputs at once (shared filters).
        # Rows [0,HO) = vertical low-pass, rows [HOP,HOP+HO) = vertical high-pass.
        z = jnp.tanh(jnp.dot(mvt, y_padded,
                             preferred_element_type=jnp.float32))               # (HOP+HO, 256)

        # Final module outputs (lane-tile / 8-sublane aligned offsets,
        # offset-0 partial widths).
        low_ref[c] = yp[:, :wo]
        high_ref[c] = yp[:, LANE:LANE + wo]
        ll_ref[c] = z[:ho, :wf]
        hl_ref[c] = z[:ho, LANE:LANE + wf]
        lh_ref[c] = z[hop:hop + ho, :wf]
        hh_ref[c] = z[hop:hop + ho, LANE:LANE + wf]


# -------------------------------- wrapper ----------------------------------
def _mxu_rows_target() -> int:
    """MXU systolic-array height: 128 on v4/v5-class chips, 256 on v6e/v7x."""
    try:
        kind = jax.devices()[0].device_kind.lower()
    except Exception:
        return 256
    return 128 if ("v4" in kind or "v5" in kind) else 256


def _pick_channel_block(nc: int, h: int, target_rows: int) -> int:
    """Largest divisor CB of NC with CB*H <= target_rows, preferring >= 2 grid
    steps (keeps both v7x TensorCores busy)."""
    if h % 8 != 0:
        return 1
    divs = [d for d in range(1, nc + 1) if nc % d == 0]
    fit = [d for d in divs if d * h <= target_rows]
    if not fit:
        return 1
    multi = [d for d in fit if nc // d >= 2]
    return max(multi) if multi else max(fit)


@jax.jit
def wnblock_forward(x):
    """WNBlock forward (mode='Stable', wavelet='db4', kernel_size=8), NCHW f32."""
    N, C, H, W = x.shape
    NC = N * C
    WO = (W + 2 * PAD - KERNEL_SIZE) // 2 + 1      # horizontal conv output width
    HM = H + 2 * PAD                               # level-1 output height
    HO = (HM + 2 * PAD - KERNEL_SIZE) // 2 + 1     # vertical conv output height
    WF = WO + 2 * PAD                              # level-2 output width
    HOP = ((HO + 7) // 8) * 8                      # 8-aligned row offset of high block
    # Single-lane-tile layout; holds for the small spatial sizes this model uses.
    assert WO <= LANE and WF <= LANE, "spatial size too large for this layout"
    assert H % 8 == 0, "H must be a multiple of 8 for the channel-blocked layout"

    CB = _pick_channel_block(NC, H, _mxu_rows_target())
    n_steps = NC // CB

    w_low = _DB4_REC_LO
    w_high = get_cmf_1d(w_low)

    # Horizontal conv matrices: compact copies (lanes 0 / 128) for the level-1
    # outputs and pre-padded copies (lanes 256+PAD / 384+PAD) feeding level 2.
    mh_lo = _conv_matrix(w_low, W, WO, PAD)
    mh_hi = _conv_matrix(w_high, W, WO, PAD)
    mh = np.zeros((W, 4 * LANE), np.float32)
    mh[:, 0:WO] = mh_lo
    mh[:, LANE:LANE + WO] = mh_hi
    mh[:, 2 * LANE + PAD:2 * LANE + PAD + WO] = mh_lo
    mh[:, 3 * LANE + PAD:3 * LANE + PAD + WO] = mh_hi

    # Row placement matrix: level-1 H zero-padding (tanh(conv(0))=0 rows).
    p = np.zeros((HM, H), np.float32)
    p[np.arange(H) + PAD, np.arange(H)] = 1.0

    # Vertical conv matrices, acting directly on the H real rows of level 1
    # (offset 2*PAD folds both the conv padding and the level-1 zero rows).
    mv_lo = _conv_matrix(w_low, H, HO, 2 * PAD)
    mv_hi = _conv_matrix(w_high, H, HO, 2 * PAD)
    mvt = np.zeros((HOP + HO, H), np.float32)
    mvt[0:HO, :] = mv_lo.T
    mvt[HOP:HOP + HO, :] = mv_hi.T

    # Fold the channel planes into the matmul M dimension in the wrapper
    # (free, contiguous reshape) so the kernel needs no relayout.
    x_rows = x.reshape(NC * H, W)
    kernel = functools.partial(_wnblock_kernel, cb=CB, h=H,
                               wo=WO, wf=WF, ho=HO, hop=HOP)

    low, high, ll, lh, hl, hh = pl.pallas_call(
        kernel,
        out_shape=(
            jax.ShapeDtypeStruct((NC, HM, WO), jnp.float32),
            jax.ShapeDtypeStruct((NC, HM, WO), jnp.float32),
            jax.ShapeDtypeStruct((NC, HO, WF), jnp.float32),
            jax.ShapeDtypeStruct((NC, HO, WF), jnp.float32),
            jax.ShapeDtypeStruct((NC, HO, WF), jnp.float32),
            jax.ShapeDtypeStruct((NC, HO, WF), jnp.float32),
        ),
        grid=(n_steps,),
        in_specs=[
            pl.BlockSpec((CB * H, W), lambda i: (i, 0)),       # CB planes / step
            pl.BlockSpec((W, 4 * LANE), lambda i: (0, 0)),     # constant block
            pl.BlockSpec((HM, H), lambda i: (0, 0)),           # constant block
            pl.BlockSpec((HOP + HO, H), lambda i: (0, 0)),     # constant block
        ],
        out_specs=(
            pl.BlockSpec((CB, HM, WO), lambda i: (i, 0, 0)),
            pl.BlockSpec((CB, HM, WO), lambda i: (i, 0, 0)),
            pl.BlockSpec((CB, HO, WF), lambda i: (i, 0, 0)),
            pl.BlockSpec((CB, HO, WF), lambda i: (i, 0, 0)),
            pl.BlockSpec((CB, HO, WF), lambda i: (i, 0, 0)),
            pl.BlockSpec((CB, HO, WF), lambda i: (i, 0, 0)),
        ),
        compiler_params=pltpu.CompilerParams(
            dimension_semantics=("parallel",)),
    )(x_rows, jnp.asarray(mh), jnp.asarray(p), jnp.asarray(mvt))

    return (low.reshape(N, C, HM, WO), high.reshape(N, C, HM, WO),
            ll.reshape(N, C, HO, WF), lh.reshape(N, C, HO, WF),
            hl.reshape(N, C, HO, WF), hh.reshape(N, C, HO, WF))


# --------------------- plain-XLA reference (for checking) ------------------
def _depthwise_conv_ref(x, w2d, stride):
    C = x.shape[1]
    kern = jnp.broadcast_to(jnp.asarray(w2d)[None, None, :, :], (C, 1) + w2d.shape)
    return jax.lax.conv_general_dilated(
        x, kern, window_strides=stride,
        padding=[(PAD, PAD), (PAD, PAD)],
        dimension_numbers=("NCHW", "OIHW", "NCHW"),
        feature_group_count=C,
        precision=jax.lax.Precision.HIGHEST)


def wnblock_reference(x):
    w_low = _DB4_REC_LO
    w_high = get_cmf_1d(w_low)
    lo = jnp.tanh(_depthwise_conv_ref(x, w_low.reshape(1, -1), (1, 2)))
    hi = jnp.tanh(_depthwise_conv_ref(x, w_high.reshape(1, -1), (1, 2)))
    ll = jnp.tanh(_depthwise_conv_ref(lo, w_low.reshape(-1, 1), (2, 1)))
    lh = jnp.tanh(_depthwise_conv_ref(lo, w_high.reshape(-1, 1), (2, 1)))
    hl = jnp.tanh(_depthwise_conv_ref(hi, w_low.reshape(-1, 1), (2, 1)))
    hh = jnp.tanh(_depthwise_conv_ref(hi, w_high.reshape(-1, 1), (2, 1)))
    return lo, hi, ll, lh, hl, hh


if __name__ == "__main__":
    key = jax.random.PRNGKey(0)
    # NCHW input; channels=4 so the channel-blocked grid has >= 2 steps.
    x = jax.random.normal(key, (2, 4, 16, 16), dtype=jnp.float32)

    outs = wnblock_forward(x)
    outs = jax.block_until_ready(outs)

    # Shape sanity (matches PyTorch conv arithmetic):
    # low/high: (2,4,28,11); ll/lh/hl/hh: (2,4,17,23)
    assert outs[0].shape == (2, 4, 28, 11) and outs[1].shape == (2, 4, 28, 11)
    for o in outs[2:]:
        assert o.shape == (2, 4, 17, 23)

    # Numerical check vs. a plain-XLA depthwise-conv reference.  Tolerance is
    # tight (f32 MXU multi-pass error is ~1e-5) so any filter/alignment bug
    # is caught by orders of magnitude.
    refs = wnblock_reference(x)
    for o, r in zip(outs, refs):
        assert o.shape == r.shape
        err = float(jnp.max(jnp.abs(o - r)))
        assert err < 1e-4, f"mismatch vs reference: {err}"

    print("KERNEL_OK")
</pallas_src>

<mosaic_0001>
module attributes {stable_mosaic.version = 11 : i64} {
  func.func @_wnblock_kernel(%arg0: i32, %arg1: memref<64x16xf32, #tpu.memory_space<vmem>>, %arg2: memref<16x512xf32, #tpu.memory_space<vmem>>, %arg3: memref<28x16xf32, #tpu.memory_space<vmem>>, %arg4: memref<41x16xf32, #tpu.memory_space<vmem>>, %arg5: memref<4x28x11xf32, #tpu.memory_space<vmem>>, %arg6: memref<4x28x11xf32, #tpu.memory_space<vmem>>, %arg7: memref<4x17x23xf32, #tpu.memory_space<vmem>>, %arg8: memref<4x17x23xf32, #tpu.memory_space<vmem>>, %arg9: memref<4x17x23xf32, #tpu.memory_space<vmem>>, %arg10: memref<4x17x23xf32, #tpu.memory_space<vmem>>) attributes {dimension_semantics = [#tpu.dimension_semantics<parallel>], iteration_bounds = array<i64: 2>, scalar_prefetch = 0 : i64, scratch_operands = 0 : i64, tpu.core_type = #tpu.core_type<tc>, window_params = [{transform_indices = @transform_0, window_bounds = array<i64: 64, 16>}, {pipeline_mode = #tpu.pipeline_mode<synchronous>, transform_indices = @transform_1, window_bounds = array<i64: 16, 512>}, {pipeline_mode = #tpu.pipeline_mode<synchronous>, transform_indices = @transform_2, window_bounds = array<i64: 28, 16>}, {pipeline_mode = #tpu.pipeline_mode<synchronous>, transform_indices = @transform_3, window_bounds = array<i64: 41, 16>}, {transform_indices = @transform_4, window_bounds = array<i64: 4, 28, 11>}, {transform_indices = @transform_5, window_bounds = array<i64: 4, 28, 11>}, {transform_indices = @transform_6, window_bounds = array<i64: 4, 17, 23>}, {transform_indices = @transform_7, window_bounds = array<i64: 4, 17, 23>}, {transform_indices = @transform_8, window_bounds = array<i64: 4, 17, 23>}, {transform_indices = @transform_9, window_bounds = array<i64: 4, 17, 23>}]} {
    %c0 = arith.constant 0 : index
    %c0_0 = arith.constant 0 : index
    %0 = vector.load %arg1[%c0, %c0_0] : memref<64x16xf32, #tpu.memory_space<vmem>>, vector<64x16xf32>
    %c0_1 = arith.constant 0 : index
    %c0_2 = arith.constant 0 : index
    %1 = vector.load %arg2[%c0_1, %c0_2] : memref<16x512xf32, #tpu.memory_space<vmem>>, vector<16x512xf32>
    %cst = arith.constant dense<0.000000e+00> : vector<64x512xf32>
    %2 = tpu.matmul %0, %1, %cst {dimension_numbers = #tpu.dot_dimension_numbers<[1], [0], [0], [1], [0, 0, 1, 1], [], []>} : vector<64x16xf32>, vector<16x512xf32>, vector<64x512xf32> -> vector<64x512xf32>
    %3 = math.tanh %2 : vector<64x512xf32>
    %c0_3 = arith.constant 0 : index
    %c0_4 = arith.constant 0 : index
    %4 = vector.load %arg3[%c0_3, %c0_4] : memref<28x16xf32, #tpu.memory_space<vmem>>, vector<28x16xf32>
    %c0_5 = arith.constant 0 : index
    %c0_6 = arith.constant 0 : index
    %5 = vector.load %arg4[%c0_5, %c0_6] : memref<41x16xf32, #tpu.memory_space<vmem>>, vector<41x16xf32>
    %6 = vector.extract_strided_slice %3 {offsets = [0, 0], sizes = [16, 512], strides = [1, 1]} : vector<64x512xf32> to vector<16x512xf32>
    %7 = vector.extract_strided_slice %6 {offsets = [0, 0], sizes = [16, 256], strides = [1, 1]} : vector<16x512xf32> to vector<16x256xf32>
    %8 = vector.extract_strided_slice %6 {offsets = [0, 256], sizes = [16, 256], strides = [1, 1]} : vector<16x512xf32> to vector<16x256xf32>
    %cst_7 = arith.constant dense<0.000000e+00> : vector<28x256xf32>
    %9 = tpu.matmul %4, %7, %cst_7 {dimension_numbers = #tpu.dot_dimension_numbers<[1], [0], [0], [1], [0, 0, 1, 1], [], []>} : vector<28x16xf32>, vector<16x256xf32>, vector<28x256xf32> -> vector<28x256xf32>
    %cst_8 = arith.constant dense<0.000000e+00> : vector<41x256xf32>
    %10 = tpu.matmul %5, %8, %cst_8 {dimension_numbers = #tpu.dot_dimension_numbers<[1], [0], [0], [1], [0, 0, 1, 1], [], []>} : vector<41x16xf32>, vector<16x256xf32>, vector<41x256xf32> -> vector<41x256xf32>
    %11 = math.tanh %10 : vector<41x256xf32>
    %12 = vector.extract_strided_slice %9 {offsets = [0, 0], sizes = [28, 11], strides = [1, 1]} : vector<28x256xf32> to vector<28x11xf32>
    %c0_9 = arith.constant 0 : index
    %c0_10 = arith.constant 0 : index
    %c0_11 = arith.constant 0 : index
    %13 = vector.load %arg5[%c0_9, %c0_10, %c0_11] : memref<4x28x11xf32, #tpu.memory_space<vmem>>, vector<1x28x11xf32>
    %14 = vector.shape_cast %13 : vector<1x28x11xf32> to vector<28x11xf32>
    %15 = vector.shape_cast %12 : vector<28x11xf32> to vector<1x28x11xf32>
    tpu.vector_store %arg5[%c0_9, %c0_10, %c0_11], %15 {strides = array<i32>} : memref<4x28x11xf32, #tpu.memory_space<vmem>>, vector<1x28x11xf32>,
    %16 = vector.extract_strided_slice %9 {offsets = [0, 128], sizes = [28, 11], strides = [1, 1]} : vector<28x256xf32> to vector<28x11xf32>
    %c0_12 = arith.constant 0 : index
    %c0_13 = arith.constant 0 : index
    %c0_14 = arith.constant 0 : index
    %17 = vector.load %arg6[%c0_12, %c0_13, %c0_14] : memref<4x28x11xf32, #tpu.memory_space<vmem>>, vector<1x28x11xf32>
    %18 = vector.shape_cast %17 : vector<1x28x11xf32> to vector<28x11xf32>
    %19 = vector.shape_cast %16 : vector<28x11xf32> to vector<1x28x11xf32>
    tpu.vector_store %arg6[%c0_12, %c0_13, %c0_14], %19 {strides = array<i32>} : memref<4x28x11xf32, #tpu.memory_space<vmem>>, vector<1x28x11xf32>,
    %20 = vector.extract_strided_slice %11 {offsets = [0, 0], sizes = [17, 23], strides = [1, 1]} : vector<41x256xf32> to vector<17x23xf32>
    %c0_15 = arith.constant 0 : index
    %c0_16 = arith.constant 0 : index
    %c0_17 = arith.constant 0 : index
    %21 = vector.load %arg7[%c0_15, %c0_16, %c0_17] : memref<4x17x23xf32, #tpu.memory_space<vmem>>, vector<1x17x23xf32>
    %22 = vector.shape_cast %21 : vector<1x17x23xf32> to vector<17x23xf32>
    %23 = vector.shape_cast %20 : vector<17x23xf32> to vector<1x17x23xf32>
    tpu.vector_store %arg7[%c0_15, %c0_16, %c0_17], %23 {strides = array<i32>} : memref<4x17x23xf32, #tpu.memory_space<vmem>>, vector<1x17x23xf32>,
    %24 = vector.extract_strided_slice %11 {offsets = [0, 128], sizes = [17, 23], strides = [1, 1]} : vector<41x256xf32> to vector<17x23xf32>
    %c0_18 = arith.constant 0 : index
    %c0_19 = arith.constant 0 : index
    %c0_20 = arith.constant 0 : index
    %25 = vector.load %arg9[%c0_18, %c0_19, %c0_20] : memref<4x17x23xf32, #tpu.memory_space<vmem>>, vector<1x17x23xf32>
    %26 = vector.shape_cast %25 : vector<1x17x23xf32> to vector<17x23xf32>
    %27 = vector.shape_cast %24 : vector<17x23xf32> to vector<1x17x23xf32>
    tpu.vector_store %arg9[%c0_18, %c0_19, %c0_20], %27 {strides = array<i32>} : memref<4x17x23xf32, #tpu.memory_space<vmem>>, vector<1x17x23xf32>,
    %28 = vector.extract_strided_slice %11 {offsets = [24, 0], sizes = [17, 23], strides = [1, 1]} : vector<41x256xf32> to vector<17x23xf32>
    %c0_21 = arith.constant 0 : index
    %c0_22 = arith.constant 0 : index
    %c0_23 = arith.constant 0 : index
    %29 = vector.load %arg8[%c0_21, %c0_22, %c0_23] : memref<4x17x23xf32, #tpu.memory_space<vmem>>, vector<1x17x23xf32>
    %30 = vector.shape_cast %29 : vector<1x17x23xf32> to vector<17x23xf32>
    %31 = vector.shape_cast %28 : vector<17x23xf32> to vector<1x17x23xf32>
    tpu.vector_store %arg8[%c0_21, %c0_22, %c0_23], %31 {strides = array<i32>} : memref<4x17x23xf32, #tpu.memory_space<vmem>>, vector<1x17x23xf32>,
    %32 = vector.extract_strided_slice %11 {offsets = [24, 128], sizes = [17, 23], strides = [1, 1]} : vector<41x256xf32> to vector<17x23xf32>
    %c0_24 = arith.constant 0 : index
    %c0_25 = arith.constant 0 : index
    %c0_26 = arith.constant 0 : index
    %33 = vector.load %arg10[%c0_24, %c0_25, %c0_26] : memref<4x17x23xf32, #tpu.memory_space<vmem>>, vector<1x17x23xf32>
    %34 = vector.shape_cast %33 : vector<1x17x23xf32> to vector<17x23xf32>
    %35 = vector.shape_cast %32 : vector<17x23xf32> to vector<1x17x23xf32>
    tpu.vector_store %arg10[%c0_24, %c0_25, %c0_26], %35 {strides = array<i32>} : memref<4x17x23xf32, #tpu.memory_space<vmem>>, vector<1x17x23xf32>,
    %36 = vector.extract_strided_slice %3 {offsets = [16, 0], sizes = [16, 512], strides = [1, 1]} : vector<64x512xf32> to vector<16x512xf32>
    %37 = vector.extract_strided_slice %36 {offsets = [0, 0], sizes = [16, 256], strides = [1, 1]} : vector<16x512xf32> to vector<16x256xf32>
    %38 = vector.extract_strided_slice %36 {offsets = [0, 256], sizes = [16, 256], strides = [1, 1]} : vector<16x512xf32> to vector<16x256xf32>
    %cst_27 = arith.constant dense<0.000000e+00> : vector<28x256xf32>
    %39 = tpu.matmul %4, %37, %cst_27 {dimension_numbers = #tpu.dot_dimension_numbers<[1], [0], [0], [1], [0, 0, 1, 1], [], []>} : vector<28x16xf32>, vector<16x256xf32>, vector<28x256xf32> -> vector<28x256xf32>
    %cst_28 = arith.constant dense<0.000000e+00> : vector<41x256xf32>
    %40 = tpu.matmul %5, %38, %cst_28 {dimension_numbers = #tpu.dot_dimension_numbers<[1], [0], [0], [1], [0, 0, 1, 1], [], []>} : vector<41x16xf32>, vector<16x256xf32>, vector<41x256xf32> -> vector<41x256xf32>
    %41 = math.tanh %40 : vector<41x256xf32>
    %42 = vector.extract_strided_slice %39 {offsets = [0, 0], sizes = [28, 11], strides = [1, 1]} : vector<28x256xf32> to vector<28x11xf32>
    %c1 = arith.constant 1 : index
    %c0_29 = arith.constant 0 : index
    %c0_30 = arith.constant 0 : index
    %43 = vector.load %arg5[%c1, %c0_29, %c0_30] : memref<4x28x11xf32, #tpu.memory_space<vmem>>, vector<1x28x11xf32>
    %44 = vector.shape_cast %43 : vector<1x28x11xf32> to vector<28x11xf32>
    %45 = vector.shape_cast %42 : vector<28x11xf32> to vector<1x28x11xf32>
    tpu.vector_store %arg5[%c1, %c0_29, %c0_30], %45 {strides = array<i32>} : memref<4x28x11xf32, #tpu.memory_space<vmem>>, vector<1x28x11xf32>,
    %46 = vector.extract_strided_slice %39 {offsets = [0, 128], sizes = [28, 11], strides = [1, 1]} : vector<28x256xf32> to vector<28x11xf32>
    %c1_31 = arith.constant 1 : index
    %c0_32 = arith.constant 0 : index
    %c0_33 = arith.constant 0 : index
    %47 = vector.load %arg6[%c1_31, %c0_32, %c0_33] : memref<4x28x11xf32, #tpu.memory_space<vmem>>, vector<1x28x11xf32>
    %48 = vector.shape_cast %47 : vector<1x28x11xf32> to vector<28x11xf32>
    %49 = vector.shape_cast %46 : vector<28x11xf32> to vector<1x28x11xf32>
    tpu.vector_store %arg6[%c1_31, %c0_32, %c0_33], %49 {strides = array<i32>} : memref<4x28x11xf32, #tpu.memory_space<vmem>>, vector<1x28x11xf32>,
    %50 = vector.extract_strided_slice %41 {offsets = [0, 0], sizes = [17, 23], strides = [1, 1]} : vector<41x256xf32> to vector<17x23xf32>
    %c1_34 = arith.constant 1 : index
    %c0_35 = arith.constant 0 : index
    %c0_36 = arith.constant 0 : index
    %51 = vector.load %arg7[%c1_34, %c0_35, %c0_36] : memref<4x17x23xf32, #tpu.memory_space<vmem>>, vector<1x17x23xf32>
    %52 = vector.shape_cast %51 : vector<1x17x23xf32> to vector<17x23xf32>
    %53 = vector.shape_cast %50 : vector<17x23xf32> to vector<1x17x23xf32>
    tpu.vector_store %arg7[%c1_34, %c0_35, %c0_36], %53 {strides = array<i32>} : memref<4x17x23xf32, #tpu.memory_space<vmem>>, vector<1x17x23xf32>,
    %54 = vector.extract_strided_slice %41 {offsets = [0, 128], sizes = [17, 23], strides = [1, 1]} : vector<41x256xf32> to vector<17x23xf32>
    %c1_37 = arith.constant 1 : index
    %c0_38 = arith.constant 0 : index
    %c0_39 = arith.constant 0 : index
    %55 = vector.load %arg9[%c1_37, %c0_38, %c0_39] : memref<4x17x23xf32, #tpu.memory_space<vmem>>, vector<1x17x23xf32>
    %56 = vector.shape_cast %55 : vector<1x17x23xf32> to vector<17x23xf32>
    %57 = vector.shape_cast %54 : vector<17x23xf32> to vector<1x17x23xf32>
    tpu.vector_store %arg9[%c1_37, %c0_38, %c0_39], %57 {strides = array<i32>} : memref<4x17x23xf32, #tpu.memory_space<vmem>>, vector<1x17x23xf32>,
    %58 = vector.extract_strided_slice %41 {offsets = [24, 0], sizes = [17, 23], strides = [1, 1]} : vector<41x256xf32> to vector<17x23xf32>
    %c1_40 = arith.constant 1 : index
    %c0_41 = arith.constant 0 : index
    %c0_42 = arith.constant 0 : index
    %59 = vector.load %arg8[%c1_40, %c0_41, %c0_42] : memref<4x17x23xf32, #tpu.memory_space<vmem>>, vector<1x17x23xf32>
    %60 = vector.shape_cast %59 : vector<1x17x23xf32> to vector<17x23xf32>
    %61 = vector.shape_cast %58 : vector<17x23xf32> to vector<1x17x23xf32>
    tpu.vector_store %arg8[%c1_40, %c0_41, %c0_42], %61 {strides = array<i32>} : memref<4x17x23xf32, #tpu.memory_space<vmem>>, vector<1x17x23xf32>,
    %62 = vector.extract_strided_slice %41 {offsets = [24, 128], sizes = [17, 23], strides = [1, 1]} : vector<41x256xf32> to vector<17x23xf32>
    %c1_43 = arith.constant 1 : index
    %c0_44 = arith.constant 0 : index
    %c0_45 = arith.constant 0 : index
    %63 = vector.load %arg10[%c1_43, %c0_44, %c0_45] : memref<4x17x23xf32, #tpu.memory_space<vmem>>, vector<1x17x23xf32>
    %64 = vector.shape_cast %63 : vector<1x17x23xf32> to vector<17x23xf32>
    %65 = vector.shape_cast %62 : vector<17x23xf32> to vector<1x17x23xf32>
    tpu.vector_store %arg10[%c1_43, %c0_44, %c0_45], %65 {strides = array<i32>} : memref<4x17x23xf32, #tpu.memory_space<vmem>>, vector<1x17x23xf32>,
    %66 = vector.extract_strided_slice %3 {offsets = [32, 0], sizes = [16, 512], strides = [1, 1]} : vector<64x512xf32> to vector<16x512xf32>
    %67 = vector.extract_strided_slice %66 {offsets = [0, 0], sizes = [16, 256], strides = [1, 1]} : vector<16x512xf32> to vector<16x256xf32>
    %68 = vector.extract_strided_slice %66 {offsets = [0, 256], sizes = [16, 256], strides = [1, 1]} : vector<16x512xf32> to vector<16x256xf32>
    %cst_46 = arith.constant dense<0.000000e+00> : vector<28x256xf32>
    %69 = tpu.matmul %4, %67, %cst_46 {dimension_numbers = #tpu.dot_dimension_numbers<[1], [0], [0], [1], [0, 0, 1, 1], [], []>} : vector<28x16xf32>, vector<16x256xf32>, vector<28x256xf32> -> vector<28x256xf32>
    %cst_47 = arith.constant dense<0.000000e+00> : vector<41x256xf32>
    %70 = tpu.matmul %5, %68, %cst_47 {dimension_numbers = #tpu.dot_dimension_numbers<[1], [0], [0], [1], [0, 0, 1, 1], [], []>} : vector<41x16xf32>, vector<16x256xf32>, vector<41x256xf32> -> vector<41x256xf32>
    %71 = math.tanh %70 : vector<41x256xf32>
    %72 = vector.extract_strided_slice %69 {offsets = [0, 0], sizes = [28, 11], strides = [1, 1]} : vector<28x256xf32> to vector<28x11xf32>
    %c2 = arith.constant 2 : index
    %c0_48 = arith.constant 0 : index
    %c0_49 = arith.constant 0 : index
    %73 = vector.load %arg5[%c2, %c0_48, %c0_49] : memref<4x28x11xf32, #tpu.memory_space<vmem>>, vector<1x28x11xf32>
    %74 = vector.shape_cast %73 : vector<1x28x11xf32> to vector<28x11xf32>
    %75 = vector.shape_cast %72 : vector<28x11xf32> to vector<1x28x11xf32>
    tpu.vector_store %arg5[%c2, %c0_48, %c0_49], %75 {strides = array<i32>} : memref<4x28x11xf32, #tpu.memory_space<vmem>>, vector<1x28x11xf32>,
    %76 = vector.extract_strided_slice %69 {offsets = [0, 128], sizes = [28, 11], strides = [1, 1]} : vector<28x256xf32> to vector<28x11xf32>
    %c2_50 = arith.constant 2 : index
    %c0_51 = arith.constant 0 : index
    %c0_52 = arith.constant 0 : index
    %77 = vector.load %arg6[%c2_50, %c0_51, %c0_52] : memref<4x28x11xf32, #tpu.memory_space<vmem>>, vector<1x28x11xf32>
    %78 = vector.shape_cast %77 : vector<1x28x11xf32> to vector<28x11xf32>
    %79 = vector.shape_cast %76 : vector<28x11xf32> to vector<1x28x11xf32>
    tpu.vector_store %arg6[%c2_50, %c0_51, %c0_52], %79 {strides = array<i32>} : memref<4x28x11xf32, #tpu.memory_space<vmem>>, vector<1x28x11xf32>,
    %80 = vector.extract_strided_slice %71 {offsets = [0, 0], sizes = [17, 23], strides = [1, 1]} : vector<41x256xf32> to vector<17x23xf32>
    %c2_53 = arith.constant 2 : index
    %c0_54 = arith.constant 0 : index
    %c0_55 = arith.constant 0 : index
    %81 = vector.load %arg7[%c2_53, %c0_54, %c0_55] : memref<4x17x23xf32, #tpu.memory_space<vmem>>, vector<1x17x23xf32>
    %82 = vector.shape_cast %81 : vector<1x17x23xf32> to vector<17x23xf32>
    %83 = vector.shape_cast %80 : vector<17x23xf32> to vector<1x17x23xf32>
    tpu.vector_store %arg7[%c2_53, %c0_54, %c0_55], %83 {strides = array<i32>} : memref<4x17x23xf32, #tpu.memory_space<vmem>>, vector<1x17x23xf32>,
    %84 = vector.extract_strided_slice %71 {offsets = [0, 128], sizes = [17, 23], strides = [1, 1]} : vector<41x256xf32> to vector<17x23xf32>
    %c2_56 = arith.constant 2 : index
    %c0_57 = arith.constant 0 : index
    %c0_58 = arith.constant 0 : index
    %85 = vector.load %arg9[%c2_56, %c0_57, %c0_58] : memref<4x17x23xf32, #tpu.memory_space<vmem>>, vector<1x17x23xf32>
    %86 = vector.shape_cast %85 : vector<1x17x23xf32> to vector<17x23xf32>
    %87 = vector.shape_cast %84 : vector<17x23xf32> to vector<1x17x23xf32>
    tpu.vector_store %arg9[%c2_56, %c0_57, %c0_58], %87 {strides = array<i32>} : memref<4x17x23xf32, #tpu.memory_space<vmem>>, vector<1x17x23xf32>,
    %88 = vector.extract_strided_slice %71 {offsets = [24, 0], sizes = [17, 23], strides = [1, 1]} : vector<41x256xf32> to vector<17x23xf32>
    %c2_59 = arith.constant 2 : index
    %c0_60 = arith.constant 0 : index
    %c0_61 = arith.constant 0 : index
    %89 = vector.load %arg8[%c2_59, %c0_60, %c0_61] : memref<4x17x23xf32, #tpu.memory_space<vmem>>, vector<1x17x23xf32>
    %90 = vector.shape_cast %89 : vector<1x17x23xf32> to vector<17x23xf32>
    %91 = vector.shape_cast %88 : vector<17x23xf32> to vector<1x17x23xf32>
    tpu.vector_store %arg8[%c2_59, %c0_60, %c0_61], %91 {strides = array<i32>} : memref<4x17x23xf32, #tpu.memory_space<vmem>>, vector<1x17x23xf32>,
    %92 = vector.extract_strided_slice %71 {offsets = [24, 128], sizes = [17, 23], strides = [1, 1]} : vector<41x256xf32> to vector<17x23xf32>
    %c2_62 = arith.constant 2 : index
    %c0_63 = arith.constant 0 : index
    %c0_64 = arith.constant 0 : index
    %93 = vector.load %arg10[%c2_62, %c0_63, %c0_64] : memref<4x17x23xf32, #tpu.memory_space<vmem>>, vector<1x17x23xf32>
    %94 = vector.shape_cast %93 : vector<1x17x23xf32> to vector<17x23xf32>
    %95 = vector.shape_cast %92 : vector<17x23xf32> to vector<1x17x23xf32>
    tpu.vector_store %arg10[%c2_62, %c0_63, %c0_64], %95 {strides = array<i32>} : memref<4x17x23xf32, #tpu.memory_space<vmem>>, vector<1x17x23xf32>,
    %96 = vector.extract_strided_slice %3 {offsets = [48, 0], sizes = [16, 512], strides = [1, 1]} : vector<64x512xf32> to vector<16x512xf32>
    %97 = vector.extract_strided_slice %96 {offsets = [0, 0], sizes = [16, 256], strides = [1, 1]} : vector<16x512xf32> to vector<16x256xf32>
    %98 = vector.extract_strided_slice %96 {offsets = [0, 256], sizes = [16, 256], strides = [1, 1]} : vector<16x512xf32> to vector<16x256xf32>
    %cst_65 = arith.constant dense<0.000000e+00> : vector<28x256xf32>
    %99 = tpu.matmul %4, %97, %cst_65 {dimension_numbers = #tpu.dot_dimension_numbers<[1], [0], [0], [1], [0, 0, 1, 1], [], []>} : vector<28x16xf32>, vector<16x256xf32>, vector<28x256xf32> -> vector<28x256xf32>
    %cst_66 = arith.constant dense<0.000000e+00> : vector<41x256xf32>
    %100 = tpu.matmul %5, %98, %cst_66 {dimension_numbers = #tpu.dot_dimension_numbers<[1], [0], [0], [1], [0, 0, 1, 1], [], []>} : vector<41x16xf32>, vector<16x256xf32>, vector<41x256xf32> -> vector<41x256xf32>
    %101 = math.tanh %100 : vector<41x256xf32>
    %102 = vector.extract_strided_slice %99 {offsets = [0, 0], sizes = [28, 11], strides = [1, 1]} : vector<28x256xf32> to vector<28x11xf32>
    %c3 = arith.constant 3 : index
    %c0_67 = arith.constant 0 : index
    %c0_68 = arith.constant 0 : index
    %103 = vector.load %arg5[%c3, %c0_67, %c0_68] : memref<4x28x11xf32, #tpu.memory_space<vmem>>, vector<1x28x11xf32>
    %104 = vector.shape_cast %103 : vector<1x28x11xf32> to vector<28x11xf32>
    %105 = vector.shape_cast %102 : vector<28x11xf32> to vector<1x28x11xf32>
    tpu.vector_store %arg5[%c3, %c0_67, %c0_68], %105 {strides = array<i32>} : memref<4x28x11xf32, #tpu.memory_space<vmem>>, vector<1x28x11xf32>,
    %106 = vector.extract_strided_slice %99 {offsets = [0, 128], sizes = [28, 11], strides = [1, 1]} : vector<28x256xf32> to vector<28x11xf32>
    %c3_69 = arith.constant 3 : index
    %c0_70 = arith.constant 0 : index
    %c0_71 = arith.constant 0 : index
    %107 = vector.load %arg6[%c3_69, %c0_70, %c0_71] : memref<4x28x11xf32, #tpu.memory_space<vmem>>, vector<1x28x11xf32>
    %108 = vector.shape_cast %107 : vector<1x28x11xf32> to vector<28x11xf32>
    %109 = vector.shape_cast %106 : vector<28x11xf32> to vector<1x28x11xf32>
    tpu.vector_store %arg6[%c3_69, %c0_70, %c0_71], %109 {strides = array<i32>} : memref<4x28x11xf32, #tpu.memory_space<vmem>>, vector<1x28x11xf32>,
    %110 = vector.extract_strided_slice %101 {offsets = [0, 0], sizes = [17, 23], strides = [1, 1]} : vector<41x256xf32> to vector<17x23xf32>
    %c3_72 = arith.constant 3 : index
    %c0_73 = arith.constant 0 : index
    %c0_74 = arith.constant 0 : index
    %111 = vector.load %arg7[%c3_72, %c0_73, %c0_74] : memref<4x17x23xf32, #tpu.memory_space<vmem>>, vector<1x17x23xf32>
    %112 = vector.shape_cast %111 : vector<1x17x23xf32> to vector<17x23xf32>
    %113 = vector.shape_cast %110 : vector<17x23xf32> to vector<1x17x23xf32>
    tpu.vector_store %arg7[%c3_72, %c0_73, %c0_74], %113 {strides = array<i32>} : memref<4x17x23xf32, #tpu.memory_space<vmem>>, vector<1x17x23xf32>,
    %114 = vector.extract_strided_slice %101 {offsets = [0, 128], sizes = [17, 23], strides = [1, 1]} : vector<41x256xf32> to vector<17x23xf32>
    %c3_75 = arith.constant 3 : index
    %c0_76 = arith.constant 0 : index
    %c0_77 = arith.constant 0 : index
    %115 = vector.load %arg9[%c3_75, %c0_76, %c0_77] : memref<4x17x23xf32, #tpu.memory_space<vmem>>, vector<1x17x23xf32>
    %116 = vector.shape_cast %115 : vector<1x17x23xf32> to vector<17x23xf32>
    %117 = vector.shape_cast %114 : vector<17x23xf32> to vector<1x17x23xf32>
    tpu.vector_store %arg9[%c3_75, %c0_76, %c0_77], %117 {strides = array<i32>} : memref<4x17x23xf32, #tpu.memory_space<vmem>>, vector<1x17x23xf32>,
    %118 = vector.extract_strided_slice %101 {offsets = [24, 0], sizes = [17, 23], strides = [1, 1]} : vector<41x256xf32> to vector<17x23xf32>
    %c3_78 = arith.constant 3 : index
    %c0_79 = arith.constant 0 : index
    %c0_80 = arith.constant 0 : index
    %119 = vector.load %arg8[%c3_78, %c0_79, %c0_80] : memref<4x17x23xf32, #tpu.memory_space<vmem>>, vector<1x17x23xf32>
    %120 = vector.shape_cast %119 : vector<1x17x23xf32> to vector<17x23xf32>
    %121 = vector.shape_cast %118 : vector<17x23xf32> to vector<1x17x23xf32>
    tpu.vector_store %arg8[%c3_78, %c0_79, %c0_80], %121 {strides = array<i32>} : memref<4x17x23xf32, #tpu.memory_space<vmem>>, vector<1x17x23xf32>,
    %122 = vector.extract_strided_slice %101 {offsets = [24, 128], sizes = [17, 23], strides = [1, 1]} : vector<41x256xf32> to vector<17x23xf32>
    %c3_81 = arith.constant 3 : index
    %c0_82 = arith.constant 0 : index
    %c0_83 = arith.constant 0 : index
    %123 = vector.load %arg10[%c3_81, %c0_82, %c0_83] : memref<4x17x23xf32, #tpu.memory_space<vmem>>, vector<1x17x23xf32>
    %124 = vector.shape_cast %123 : vector<1x17x23xf32> to vector<17x23xf32>
    %125 = vector.shape_cast %122 : vector<17x23xf32> to vector<1x17x23xf32>
    tpu.vector_store %arg10[%c3_81, %c0_82, %c0_83], %125 {strides = array<i32>} : memref<4x17x23xf32, #tpu.memory_space<vmem>>, vector<1x17x23xf32>,
    return
  }
  func.func @transform_0(%arg0: i32) -> (i32, i32) {
    %c0_i32 = arith.constant 0 : i32
    %c0_i32_0 = arith.constant 0 : i32
    return %arg0, %c0_i32 : i32, i32
  }
  func.func @transform_1(%arg0: i32) -> (i32, i32) {
    %c0_i32 = arith.constant 0 : i32
    %c0_i32_0 = arith.constant 0 : i32
    %c0_i32_1 = arith.constant 0 : i32
    return %c0_i32, %c0_i32_0 : i32, i32
  }
  func.func @transform_2(%arg0: i32) -> (i32, i32) {
    %c0_i32 = arith.constant 0 : i32
    %c0_i32_0 = arith.constant 0 : i32
    %c0_i32_1 = arith.constant 0 : i32
    return %c0_i32, %c0_i32_0 : i32, i32
  }
  func.func @transform_3(%arg0: i32) -> (i32, i32) {
    %c0_i32 = arith.constant 0 : i32
    %c0_i32_0 = arith.constant 0 : i32
    %c0_i32_1 = arith.constant 0 : i32
    return %c0_i32, %c0_i32_0 : i32, i32
  }
  func.func @transform_4(%arg0: i32) -> (i32, i32, i32) {
    %c0_i32 = arith.constant 0 : i32
    %c0_i32_0 = arith.constant 0 : i32
    %c0_i32_1 = arith.constant 0 : i32
    return %arg0, %c0_i32, %c0_i32_0 : i32, i32, i32
  }
  func.func @transform_5(%arg0: i32) -> (i32, i32, i32) {
    %c0_i32 = arith.constant 0 : i32
    %c0_i32_0 = arith.constant 0 : i32
    %c0_i32_1 = arith.constant 0 : i32
    return %arg0, %c0_i32, %c0_i32_0 : i32, i32, i32
  }
  func.func @transform_6(%arg0: i32) -> (i32, i32, i32) {
    %c0_i32 = arith.constant 0 : i32
    %c0_i32_0 = arith.constant 0 : i32
    %c0_i32_1 = arith.constant 0 : i32
    return %arg0, %c0_i32, %c0_i32_0 : i32, i32, i32
  }
  func.func @transform_7(%arg0: i32) -> (i32, i32, i32) {
    %c0_i32 = arith.constant 0 : i32
    %c0_i32_0 = arith.constant 0 : i32
    %c0_i32_1 = arith.constant 0 : i32
    return %arg0, %c0_i32, %c0_i32_0 : i32, i32, i32
  }
  func.func @transform_8(%arg0: i32) -> (i32, i32, i32) {
    %c0_i32 = arith.constant 0 : i32
    %c0_i32_0 = arith.constant 0 : i32
    %c0_i32_1 = arith.constant 0 : i32
    return %arg0, %c0_i32, %c0_i32_0 : i32, i32, i32
  }
  func.func @transform_9(%arg0: i32) -> (i32, i32, i32) {
    %c0_i32 = arith.constant 0 : i32
    %c0_i32_0 = arith.constant 0 : i32
    %c0_i32_1 = arith.constant 0 : i32
    return %arg0, %c0_i32, %c0_i32_0 : i32, i32, i32
  }
}

</mosaic_0001>

<bundles_post_ra>
// kernel: wnblock_forward.1
= control target key start
LH: loop header
LB: loop body
LE: loop exit
PB: predicated region body
PF: predicated region fallthrough
CT: control target
= control target key end

     0   :  { %15 = vsyncpa [#allocation3], 0  ;;  %s3161_s0 = inlined_call_operand.hbm [shape: f32[128,16], index: 0, kind: input, shape index: {}]   ;;  %s3162_s1 = inlined_call_operand.hbm [shape: f32[16,512], index: 1, kind: input, shape index: {}]   ;;  %s3163_s2 = inlined_call_operand.hbm [shape: f32[28,16], index: 2, kind: input, shape index: {}]   ;;  %s3164_s3 = inlined_call_operand.hbm [shape: f32[41,16], index: 3, kind: input, shape index: {}]   ;;  %s3165_s4 = inlined_call_operand.vmem [shape: f32[8,28,11], index: 4, kind: output, shape index: {0}]   ;;  %s3166_s5 = inlined_call_operand.vmem [shape: f32[8,28,11], index: 5, kind: output, shape index: {1}]   ;;  %s3167_s6 = inlined_call_operand.vmem [shape: f32[8,17,23], index: 6, kind: output, shape index: {2}]   ;;  %s3168_s7 = inlined_call_operand.vmem [shape: f32[8,17,23], index: 7, kind: output, shape index: {3}]   ;;  %s3169_s8 = inlined_call_operand.vmem [shape: f32[8,17,23], index: 8, kind: output, shape index: {4}]   ;;  %s3170_s9 = inlined_call_operand.vmem [shape: f32[8,17,23], index: 9, kind: output, shape index: {5}]  }
   0x1   :  { %17 = vsyncpa [#allocation3 + $0x1], 0 }
   0x2   :  { %18 = vsyncpa [#allocation5], 0 }
   0x3   :  { %19 = vsyncpa [#allocation8], 0  ;;  %s2603_s30 = smov 0   ;;  %s2605_s10 = smov 0  }
   0x4   :  { %s2607_s11 = smov 0   ;;  %s2609_s12 = smov 0  }
   0x5 LB: > { %s3173_s13 = sadd.s32 4294967295, %s2542_s12   ;;  %p45_p0 = scmp.ne.s32.totalorder %s2534_s10, %s2530_s30  ;;  %s2542_s12 = sphi %s2609_s12, %s3192_s12   ;;  %s2538_s11 = sphi %s2607_s11, %s3191_s11   ;;  %s2534_s10 = sphi %s2605_s10, %s3190_s10   ;;  %s2530_s30 = sphi %s2603_s30, %s3189_s30  }
   0x6   : > { %p2625_p1 = scmp.eq.s32.totalorder %s3173_s13, 0  ;;  %p2006_p2 = scmp.ge.s32.totalorder %s2542_s12, 1 }
   0x7   : > { %p275_p3 = scmp.lt.s32.totalorder %s2542_s12, 3  ;;  %s2544_s17 = smov [#allocation4]  }
   0x8   : > { %s3178_s14 = scalar_select %p2625_p1, 1, 0 }
   0x9   : > { %p2633_p4 = por %p2625_p1, %p45_p0  ;;  %p2637_p5 = pnand %p2006_p2, %p275_p3 }
   0xa   : > { %s287_s18 = sshll.u32 %s2544_s17, 4  ;;  %s2545_s20 = smov [#allocation6]   ;;  %s288_s18 = int_to_ptr.vmem [resolvable:$true] %s287_s18 }
   0xb   : > { %s3179_s15 = scalar_select %p2633_p4, 1, 0 }
   0xc   : > { %s3180_s16 = scalar_select %p2637_p5, 1, 0 }
   0xd   : > { %p2173_p6 = pneg %p2637_p5  ;;  %s300_s21 = sshll.u32 %s2545_s20, 4  ;;  %s301_s21 = int_to_ptr.vmem [resolvable:$true] %s300_s21 }
   0xe   : > { %s2405_s22 = scalar_lea.vmem %s288_s18, 1024  ;;  %p2413_p12 = scmp.lt.s32.totalorder %s288_s18, %s288_s18 }
   0xf   : > { %p2645_p7 = pnand %p2173_p6, %p2625_p1  ;;  %p2406_p9 = scmp.ne.s32.totalorder %s288_s18, %s2405_s22 }
  0x10   : > { %p2414_p13 = scmp.lt.s32.totalorder %s2405_s22, %s2405_s22 }
  0x11   : > { %p2396_p8 = pneg %p2645_p7 }
  0x12   : > { %p2415_p0 = por %p2414_p13, %p2413_p12 }
  0x13   : > { %p2408_p10 = pnand %p2406_p9, %p2396_p8 }
  0x15   : > { %p2409_p11 = pneg %p2408_p10 }
  0x17   : > { %p2416_p2 = pnand %p2415_p0, %p2409_p11 }
  0x19   : > { %2419 = shalt.err (!%p2416_p2)
}
  0x1a   : > { %s2546_s23 = smov 512   ;;  %s2547_s24 = smov 32  }
  0x1b   : > { %2176 = dma.hbm_to_vmem [thread:$0]  (!%p2645_p7), %s3162_s1, 1024, %s288_s18, [#allocation5], %s2546_s23, %s2546_s23, %s2547_s24  }
  0x1c   : > { %s2431_s27 = scalar_lea.vmem %s301_s21, 512  ;;  %p2439_p10 = scmp.lt.s32.totalorder %s301_s21, %s301_s21 }
  0x1d   : > { %p2432_p3 = scmp.ne.s32.totalorder %s301_s21, %s2431_s27  ;;  %p2440_p1 = scmp.lt.s32.totalorder %s2431_s27, %s2431_s27 }
  0x1f   : > { %p2434_p6 = pnand %p2432_p3, %p2396_p8  ;;  %p2441_p12 = por %p2440_p1, %p2439_p10 }
  0x21   : > { %p2435_p9 = pneg %p2434_p6 }
  0x23   : > { %p2442_p11 = pnand %p2441_p12, %p2435_p9 }
  0x25   : > { %2445 = shalt.err (!%p2442_p11)
}
  0x26   : > { %s3174_s28 = smov 128   ;;  %s3175_s29 = smov 8  }
  0x27   : > { %2179 = dma.hbm_to_vmem [thread:$0]  (!%p2645_p7), %s3163_s2, 512, %s301_s21, [#allocation5], %s3174_s28, %s3174_s28, %s3175_s29  }
  0x28   : > { %s2550_s18 = smov [#allocation7]   ;;  %s2671_s22 = sadd.s32 1, %s2542_s12  }
  0x29   : > { %s313_s20 = sshll.u32 %s2550_s18, 4  ;;  %s314_s20 = int_to_ptr.vmem [resolvable:$true] %s313_s20 }
  0x2a   : > { %s2457_s23 = scalar_lea.vmem %s314_s20, 768  ;;  %p2465_p2 = scmp.lt.s32.totalorder %s314_s20, %s314_s20 }
  0x2b   : > { %p2458_p1 = scmp.ne.s32.totalorder %s314_s20, %s2457_s23  ;;  %p2466_p3 = scmp.lt.s32.totalorder %s2457_s23, %s2457_s23 }
  0x2d   : > { %p2460_p13 = pnand %p2458_p1, %p2396_p8  ;;  %p2467_p6 = por %p2466_p3, %p2465_p2 }
  0x2f   : > { %p2461_p0 = pneg %p2460_p13 }
  0x31   : > { %p2468_p9 = pnand %p2467_p6, %p2461_p0 }
  0x33   : > { %2471 = shalt.err (!%p2468_p9)
}
  0x34   : > { %2182 = dma.hbm_to_vmem [thread:$0]  (!%p2645_p7), %s3164_s3, 768, %s314_s20, [#allocation8], %s3174_s28, %s3174_s28, %s3175_s29  }
  0x35   : > { %s29_s25 = ssub.s32 %s2542_s12, %s2671_s22  ;;  %s32_s26 = sadd.s32 1, %s2538_s11 }
  0x36   : > { %p30_p8 = scmp.eq.s32.totalorder %s29_s25, 0  ;;  %p39_p10 = scmp.ne.s32.totalorder %s2538_s11, %s2534_s10 }
  0x37   : > { %p40_p12 = scmp.eq.s32.totalorder %s2542_s12, 0  ;;  %p2190_p11 = scmp.lt.s32.totalorder %s2542_s12, 2 }
  0x38   : > { %s2692_s19 = scalar_select %p30_p8, %s2538_s11, %s32_s26  }
  0x39   : > { %p41_p1 = por %p40_p12, %p39_p10  ;;  %s327_s27 = sand.u32 1, %s2538_s11  }
  0x3a   : > { %s2011_s30 = sshll.u32 %s327_s27, 6  ;;  %s2151_s17 = sshll.u32 %s2542_s12, 10 }
  0x3b   : > { %s2699_s21 = scalar_lea.hbm %s3161_s0, %s2151_s17  ;;  %s331_s20 = scalar_lea.vmem [#allocation2], %s2011_s30 }
  0x3c   : > { %s338_s24 = sshll.u32 %s331_s20, 4  ;;  %p2703_p7 = pnand %p2190_p11, %p41_p1  ;;  %s2701_s24 = int_to_ptr.vmem [resolvable:$true] %s338_s24 }
  0x3d   : > { %s2707_s26 = scalar_lea.sflag [#allocation3], %s327_s27  ;;  %s2472_s13 = scalar_lea.hbm %s2699_s21, 1024 }
  0x3e   : > { %p2473_p13 = scmp.ne.s32.totalorder %s2699_s21, %s2472_s13  ;;  %p2474_p0 = pneg %p2703_p7 }
  0x3f   : > { %s2477_s30 = scalar_lea.hbm %s3161_s0, 2048  ;;  %p2478_p6 = scmp.lt.s32.totalorder %s2699_s21, %s3161_s0 }
  0x40   : > { %p2475_p2 = pnand %p2474_p0, %p2473_p13  ;;  %p2479_p9 = scmp.lt.s32.totalorder %s2477_s30, %s2472_s13 }
  0x42   : > { %p2476_p3 = pneg %p2475_p2  ;;  %p2480_p8 = por %p2479_p9, %p2478_p6 }
  0x44   : > { %p2481_p10 = pnand %p2480_p8, %p2476_p3 }
  0x46   : > { %2484 = shalt.err (!%p2481_p10)
}
  0x47   : > { %s2485_s27 = scalar_lea.vmem %s2701_s24, 1024  ;;  %s2551_s28 = smov [#allocation2]  }
  0x48   : > { %p2486_p12 = scmp.ne.s32.totalorder %s2701_s24, %s2485_s27  ;;  %s2490_s29 = sshll.u32 %s2551_s28, 4  ;;  %s2491_s29 = int_to_ptr.vmem [resolvable:$false] %s2490_s29 }
  0x49   : > { %s2492_s17 = scalar_lea.vmem %s2491_s29, 2048  ;;  %p2493_p13 = scmp.lt.s32.totalorder %s2701_s24, %s2491_s29 }
  0x4a   : > { %p2488_p11 = pnand %p2486_p12, %p2474_p0  ;;  %p2494_p2 = scmp.lt.s32.totalorder %s2492_s17, %s2485_s27 }
  0x4c   : > { %p2489_p1 = pneg %p2488_p11  ;;  %p2495_p4 = por %p2494_p2, %p2493_p13 }
  0x4e   : > { %p2496_p5 = pnand %p2495_p4, %p2489_p1 }
  0x50   : > { %2499 = shalt.err (!%p2496_p5)
}
  0x51   : > { %s3183_s13 = smov 8   ;;  %s3184_s18 = smov 128  }
  0x52   : > { %2186 = dma.hbm_to_vmem [thread:$0]  (!%p2703_p7), %s2699_s21, 1024, %s2701_s24, %s2707_s26, %s3184_s18, %s3184_s18, %s3183_s13  }
  0x53   : > { %p3185_p0 = scmp.ne.s32.totalorder %s3180_s16, 0 }
  0x54   : > { %s352_s28 = sand.u32 (!%p3185_p0), 1, %s2534_s10   ;;  %p3186_p4 = scmp.ne.s32.totalorder (!%p3185_p0), %s3179_s15, 0 }
  0x55   : > { %350 = sbr.rel (%p3185_p0) target bundleno = 645 (0x285), region = 36  ;;  %s2015_s29 = sshll.u32 (!%p3185_p0), %s352_s28, 6 }
  0x56   : > { %s353_s30 = scalar_lea.sflag (!%p3185_p0), [#allocation3], %s352_s28  ;;  %s2734_s23 = scalar_lea.vmem (!%p3185_p0), [#allocation2], %s2015_s29 }
  0x5a   : > { %2517 = dma.done.wait (%p3186_p4), %s353_s30, 1024  }
  0x5b   : > { %2519 = vsyncadd (%p3186_p4), %s353_s30, 4294966272  ;;  %p3187_p5 = scmp.ne.s32.totalorder %s3178_s14, 0 }
  0x5d   : > { %2521 = dma.done.wait (%p3187_p5), [#allocation5], 1536  }
  0x5e   : > { %2523 = vsyncadd (%p3187_p5), [#allocation5], 4294965760 }
  0x5f   : > { %2525 = dma.done.wait (%p3187_p5), [#allocation8], 768  }
  0x60   : > { %2527 = vsyncadd (%p3187_p5), [#allocation8], 4294966528  ;;  %v2552_v0 = vmov 0.0   ;;  %v490_v1 = vld [vmem:[#allocation4 + $0x28] sm:$0xff]  ;;  %v489_v2 = vld [vmem:[#allocation4 + $0x20] sm:$0xff]  ;;  %vm493_vm0 = vcmask 130048  }
  0x61   : > { %582 = vmatprep.mubr.f32.mxu0 %v2552_v0  ;;  %707 = vmatprep.mubr.f32.mxu1 %v2552_v0  ;;  %v486_v3 = vld [vmem:[#allocation4 + $0x8] sm:$0xff]  ;;  %v485_v4 = vld [vmem:[#allocation4] sm:$0xff]  ;;  %v492_v6 = vld [vmem:[#allocation4 + $0x38] sm:$0xff]  ;;  %s3188_s14 = sadd.s32 4294967295, %s2542_s12   ;;  %vm1018_vm1 = vcmask 89088   ;;  %vm1022_vm2 = vcmask 84992  }
  0x62   : > { %546 = vmatprep.subr.mxu0 %v490_v1  ;;  %v477_v5 = vld [vmem:[%s2734_s23] sm:$0xff]  ;;  %v491_v7 = vld [vmem:[#allocation4 + $0x30] sm:$0xff]  ;;  %v488_v8 = vld [vmem:[#allocation4 + $0x18] sm:$0xff]  ;;  %2154 = vmatprep.subr.mxu1 %v492_v6  ;;  %s2019_s15 = sshll.u32 %s3188_s14, 2  ;;  %vm1028_vm3 = vcmask 187392   ;;  %vm1031_vm4 = vcmask 180224  }
  0x63   : > { %547 = vmatpush1.msra.mxu0 %v489_v2  ;;  %v487_v9 = vld [vmem:[#allocation4 + $0x10] sm:$0xff]  ;;  %v478_v10 = vld [vmem:[%s2734_s23 + $0x8] sm:$0xff]  ;;  %2156 = vmatpush1.msra.mxu1 %v491_v7  ;;  %v480_v12 = vld [vmem:[%s2734_s23 + $0x18] sm:$0xff]  ;;  %p436_p7 = scmp.lt.s32.totalorder %s2019_s15, 7 }
  0x64   : > { %548 = vmatprep.subr.mxu0 %v486_v3  ;;  %2155 = vmatprep.subr.mxu1 %v488_v8  ;;  %v479_v11 = vld [vmem:[%s2734_s23 + $0x10] sm:$0xff]  ;;  %v481_v13 = vld [vmem:[%s2734_s23 + $0x20] sm:$0xff]  ;;  %v482_v14 = vld [vmem:[%s2734_s23 + $0x28] sm:$0xff] }
  0x65   : > { %549 = vmatpush1.msra.mxu0 %v485_v4  ;;  %2157 = vmatpush1.msra.mxu1 %v487_v9  ;;  %v483_v15 = vld [vmem:[%s2734_s23 + $0x30] sm:$0xff]  ;;  %v484_v16 = vld [vmem:[%s2734_s23 + $0x38] sm:$0xff]  ;;  %v2798_v38 = vld [vmem:[#allocation6] sm:$0xff]  ;;  %s3194_s15 = smov (!%p436_p7, %s2019_s15), 7 }
  0x66   : > { %2033 = vmatmul.mubr.msk.f32.vlgmr.msra.gmra.mxu0 %vm493_vm0, %v477_v5  ;;  %659 = vmatprep.subr.mxu0 %v492_v6  ;;  %v2807_v43 = vld [vmem:[#allocation6 + $0x8] sm:$0xff]  ;;  %v2814_v50 = vld [vmem:[#allocation6 + $0x10] sm:$0xff]  ;;  %v2819_v54 = vld [vmem:[#allocation6 + $0x18] sm:$0xf]  ;;  %s2152_s16 = sshll.u32 %s3194_s15, 5  ;;  %s2998_s27 = smul.u32 24, %s3194_s15 }
  0x67   : > { %588 = vmatprep.mubr.f32.mxu0 %v2552_v0  ;;  %660 = vmatpush1.msra.mxu0 %v491_v7  ;;  %s2954_s25 = scalar_lea.vmem %s3165_s4, %s2152_s16  ;;  %s2959_s12 = scalar_lea.vmem %s3166_s5, %s2152_s16 }
  0x68   : > { %661 = vmatprep.subr.mxu0 %v488_v8  ;;  %2043 = vmatmul.mubr.msk.f32.vlgmr.msra.gmra.mxu1 %vm493_vm0, %v479_v11  ;;  %s3008_s18 = scalar_lea.vmem %s3167_s6, %s2998_s27  ;;  %s3016_s30 = scalar_lea.vmem %s3169_s8, %s2998_s27 }
  0x69   : > { %662 = vmatpush1.msra.mxu0 %v487_v9  ;;  %713 = vmatprep.mubr.f32.mxu1 %v2552_v0  ;;  %s3038_s15 = scalar_lea.vmem %s3168_s7, %s2998_s27  ;;  %s3046_s24 = scalar_lea.vmem %s3170_s9, %s2998_s27 }
  0x6a   : > { %2034 = vmatmul.mubr.msk.f32.gmra.mxu0 %vm493_vm0, %v478_v10 }
  0x6b   : > { %594 = vmatprep.mubr.f32.mxu0 %v2552_v0 }
  0x6c   : > { %2044 = vmatmul.mubr.msk.f32.gmra.mxu1 %vm493_vm0, %v480_v12 }
  0x6d   : > { %719 = vmatprep.mubr.f32.mxu1 %v2552_v0 }
  0x6e   : > { %2035 = vmatmul.mubr.msk.f32.gmra.mxu0 %vm493_vm0, %v479_v11  ;;  %v2847_v11 = vld [vmem:[#allocation7 + $0x8] sm:$0xff] }
  0x6f   : > { %600 = vmatprep.mubr.f32.mxu0 %v2552_v0 }
  0x70   : > { %2045 = vmatmul.mubr.msk.f32.gmra.mxu1 %vm493_vm0, %v481_v13 }
  0x71   : > { %725 = vmatprep.mubr.f32.mxu1 %v2552_v0 }
  0x72   : > { %2036 = vmatmul.mubr.msk.f32.gmra.mxu0 %vm493_vm0, %v480_v12 }
  0x73   : > { %606 = vmatprep.mubr.f32.mxu0 %v2552_v0 }
  0x74   : > { %2046 = vmatmul.mubr.msk.f32.gmra.mxu1 %vm493_vm0, %v482_v14 }
  0x75   : > { %731 = vmatprep.mubr.f32.mxu1 %v2552_v0 }
  0x76   : > { %2037 = vmatmul.mubr.msk.f32.gmra.mxu0 %vm493_vm0, %v481_v13 }
  0x77   : > { %612 = vmatprep.mubr.f32.mxu0 %v2552_v0 }
  0x78   : > { %2047 = vmatmul.mubr.msk.f32.gmra.mxu1 %vm493_vm0, %v483_v15 }
  0x79   : > { %737 = vmatprep.mubr.f32.mxu1 %v2552_v0 }
  0x7a   : > { %2038 = vmatmul.mubr.msk.f32.gmra.mxu0 %vm493_vm0, %v482_v14 }
  0x7b   : > { %618 = vmatprep.mubr.f32.mxu0 %v2552_v0 }
  0x7c   : > { %2048 = vmatmul.mubr.msk.f32.gmra.mxu1 %vm493_vm0, %v484_v16 }
  0x7d   : > { %969 = vmatprep.mubr.f32.mxu1 %v2552_v0 }
  0x7e   : > { %2039 = vmatmul.mubr.msk.f32.gmra.mxu0 %vm493_vm0, %v483_v15  ;;  %v2854_v15 = vld [vmem:[#allocation7 + $0x10] sm:$0xff] }
  0x7f   : > { %624 = vmatprep.mubr.f32.mxu0 %v2552_v0 }
  0x82   : > { %2040 = vmatmul.mubr.msk.f32.gmra.mxu0 %vm493_vm0, %v484_v16 }
  0x83   : > { %695 = vmatprep.mubr.f32.mxu0 %v2552_v0 }
  0x86   : > { %2041 = vmatmul.mubr.msk.f32.vlgmr.msra.gmra.mxu0 %vm493_vm0, %v477_v5  ;;  %v2839_v5 = vld [vmem:[#allocation7] sm:$0xff] }
  0x87   : > { %701 = vmatprep.mubr.f32.mxu0 %v2552_v0 }
  0x8a   : > { %2042 = vmatmul.mubr.msk.f32.gmra.mxu0 %vm493_vm0, %v478_v10 }
  0x8b   : > { %862 = vmatprep.mubr.f32.mxu0 %v2552_v0 }
 0x126   : > { %v584_v17 = vpop.f32.mrf.mxu0 }
 0x128   : > { %v586_v18 = vpop.f32.mrf.mxu0  ;;  %v2790_v20 = vpop.f32.mrf.mxu1 }
 0x12a   : > { %v590_v19 = vpop.f32.mrf.mxu0  ;;  %v2792_v22 = vpop.f32.mrf.mxu1 }
 0x12c   : > { %v592_v21 = vpop.f32.mrf.mxu0  ;;  %v715_v24 = vpop.f32.mrf.mxu1 }
 0x12d   : > { %2234 = vtanh.f32 %v592_v21 }
 0x12e   : > { %2236 = vtanh.f32 %v590_v19  ;;  %v596_v23 = vpop.f32.mrf.mxu0  ;;  %v717_v27 = vpop.f32.mrf.mxu1  ;;  %v2874_v19 = vld [vmem:[#allocation7 + $0x20] sm:$0xff] }
 0x12f   : > { %2238 = vtanh.f32 %v586_v18 }
 0x130   : > { %2240 = vtanh.f32 %v584_v17  ;;  %v598_v25 = vpop.f32.mrf.mxu0  ;;  %v2794_v29 = vpop.f32.mrf.mxu1  ;;  %v2863_v17 = vld [vmem:[#allocation7 + $0x18] sm:$0xff] }
 0x132   : > { %v602_v26 = vpop.f32.mrf.mxu0  ;;  %v2796_v32 = vpop.f32.mrf.mxu1 }
 0x134   : > { %v604_v28 = vpop.f32.mrf.mxu0  ;;  %v727_v39 = vpop.f32.mrf.mxu1 }
 0x135   : > { %2242 = vtanh.f32 %v604_v28 }
 0x136   : > { %2244 = vtanh.f32 %v602_v26  ;;  %v608_v30 = vpop.f32.mrf.mxu0  ;;  %v729_v44 = vpop.f32.mrf.mxu1 }
 0x137   : > { %2246 = vtanh.f32 %v598_v25 }
 0x138   : > { %2248 = vtanh.f32 %v596_v23  ;;  %v610_v31 = vpop.f32.mrf.mxu0  ;;  %v2841_v6 = vpop.f32.mrf.mxu1 }
 0x13a   : > { %v2235_v33 = vpop.eup %2234  ;;  %v614_v34 = vpop.f32.mrf.mxu0 }
 0x13b   : > { %v2237_v35 = vpop.eup %2236  ;;  %826 = vmatprep.subr.mxu0 %v2235_v33  ;;  %v735_v12 = vpop.f32.mrf.mxu1 }
 0x13c   : > { %v2239_v36 = vpop.eup %2238  ;;  %v616_v37 = vpop.f32.mrf.mxu0  ;;  %827 = vmatpush1.msra.mxu0 %v2237_v35 }
 0x13d   : > { %v2241_v40 = vpop.eup %2240  ;;  %2250 = vtanh.f32 %v616_v37  ;;  %828 = vmatprep.subr.mxu0 %v2239_v36  ;;  %v739_v16 = vpop.f32.mrf.mxu1 }
 0x13e   : > { %v2800_v41 = vpop.f32.mrf.mxu0  ;;  %829 = vmatpush1.msra.mxu0 %v2241_v40  ;;  %2252 = vtanh.f32 %v610_v31 }
 0x13f   : > { %2049 = vmatmul.mubr.msk.f32.vlgmr.msra.gmra.mxu0 %vm493_vm0, %v2798_v38  ;;  %2254 = vtanh.f32 %v614_v34  ;;  %v741_v18 = vpop.f32.mrf.mxu1 }
 0x140   : > { %v2804_v42 = vpop.f32.mrf.mxu0  ;;  %868 = vmatprep.mubr.f32.mxu0 %v2552_v0  ;;  %2256 = vtanh.f32 %v729_v44 }
 0x141   : > { %2258 = vtanh.f32 %v608_v30 }
 0x142   : > { %v2243_v45 = vpop.eup %2242  ;;  %v2809_v46 = vpop.f32.mrf.mxu0  ;;  %2260 = vtanh.f32 %v2790_v20  ;;  %v785_v20 = vld [vmem:[#allocation7 + $0x28] sm:$0x1] }
 0x143   : > { %v2245_v47 = vpop.eup %2244  ;;  %2050 = vmatmul.mubr.msk.f32.gmra.mxu0 %vm493_vm0, %v2807_v43  ;;  %1070 = vmatprep.subr.mxu0 %v2243_v45  ;;  %2262 = vtanh.f32 %v715_v24 }
 0x144   : > { %v2247_v48 = vpop.eup %2246  ;;  %v628_v49 = vpop.f32.mrf.mxu0  ;;  %1071 = vmatpush1.msra.mxu0 %v2245_v47  ;;  %874 = vmatprep.mubr.f32.mxu0 %v2552_v0  ;;  %2264 = vtanh.f32 %v717_v27 }
 0x145   : > { %v2249_v51 = vpop.eup %2248  ;;  %1072 = vmatprep.subr.mxu0 %v2247_v48 }
 0x146   : > { %v697_v52 = vpop.f32.mrf.mxu0  ;;  %1073 = vmatpush1.msra.mxu0 %v2249_v51 }
 0x147   : > { %2051 = vmatmul.mubr.msk.f32.gmra.mxu0 %vm493_vm0, %v2814_v50 }
 0x148   : > { %v699_v53 = vpop.f32.mrf.mxu0  ;;  %880 = vmatprep.mubr.f32.mxu0 %v2552_v0 }
 0x14a   : > { %v2251_v55 = vpop.eup %2250  ;;  %v703_v56 = vpop.f32.mrf.mxu0 }
 0x14b   : > { %2052 = vmatmul.mubr.msk.f32.gmra.mxu0 %vm493_vm0, %v2819_v54  ;;  %1298 = vmatprep.subr.mxu0 %v2251_v55  ;;  %v2253_v58 = vpop.eup %2252 }
 0x14c   : > { %v705_v57 = vpop.f32.mrf.mxu0  ;;  %1106 = vmatprep.mubr.f32.mxu0 %v2552_v0  ;;  %v2255_v59 = vpop.eup %2254 }
 0x14d   : > { %2266 = vtanh.f32 %v705_v57  ;;  %v2257_v60 = vpop.eup %2256 }
 0x14e   : > { %2268 = vtanh.f32 %v703_v56  ;;  %v2259_v61 = vpop.eup %2258 }
 0x14f   : > { %2270 = vtanh.f32 %v699_v53  ;;  %2059 = vmatmul.mubr.msk.f32.vlgmr.msra.gmra.mxu0 %vm493_vm0, %v2798_v38  ;;  %v2261_v62 = vpop.eup %2260 }
 0x150   : > { %2272 = vtanh.f32 %v697_v52  ;;  %1299 = vmatpush1.msra.mxu0 %v2255_v59  ;;  %1112 = vmatprep.mubr.f32.mxu0 %v2552_v0  ;;  %v2263_v63 = vpop.eup %2262 }
 0x151   : > { %2274 = vtanh.f32 %v2792_v22  ;;  %1300 = vmatprep.subr.mxu0 %v2253_v58  ;;  %v2265_v1 = vpop.eup %2264 }
 0x152   : > { %1301 = vmatpush1.msra.mxu0 %v2259_v61  ;;  %2276 = vtanh.f32 %v727_v39 }
 0x153   : > { %2278 = vtanh.f32 %v2794_v29  ;;  %2060 = vmatmul.mubr.msk.f32.gmra.mxu0 %vm493_vm0, %v2807_v43  ;;  %1387 = vmatprep.subr.mxu0 %v2257_v60 }
 0x154   : > { %2280 = vtanh.f32 %v2796_v32  ;;  %1118 = vmatprep.mubr.f32.mxu0 %v2552_v0 }
 0x155   : > { %2282 = vtanh.f32 %v628_v49 }
 0x156   : > { %2284 = vtanh.f32 %v2804_v42 }
 0x157   : > { %2061 = vmatmul.mubr.msk.f32.gmra.mxu0 %vm493_vm0, %v2814_v50  ;;  %2286 = vtanh.f32 %v2809_v46 }
 0x158   : > { %1124 = vmatprep.mubr.f32.mxu0 %v2552_v0  ;;  %2288 = vtanh.f32 %v741_v18 }
 0x159   : > { %2290 = vtanh.f32 %v2800_v41 }
 0x15a   : > { %v2267_v2 = vpop.eup %2266  ;;  %2292 = vtanh.f32 %v739_v16 }
 0x15b   : > { %v2269_v3 = vpop.eup %2268  ;;  %933 = vmatprep.subr.mxu1 %v2267_v2  ;;  %2062 = vmatmul.mubr.msk.f32.gmra.mxu0 %vm493_vm0, %v2819_v54  ;;  %2294 = vtanh.f32 %v735_v12 }
 0x15c   : > { %v2271_v4 = vpop.eup %2270  ;;  %934 = vmatpush1.msra.mxu1 %v2269_v3  ;;  %1334 = vmatprep.mubr.f32.mxu0 %v2552_v0  ;;  %2296 = vtanh.f32 %v2841_v6 }
 0x15d   : > { %v2273_v7 = vpop.eup %2272  ;;  %935 = vmatprep.subr.mxu1 %v2271_v4 }
 0x15e   : > { %v2275_v8 = vpop.eup %2274  ;;  %936 = vmatpush1.msra.mxu1 %v2273_v7 }
 0x15f   : > { %v2277_v9 = vpop.eup %2276  ;;  %2053 = vmatmul.mubr.msk.f32.vlgmr.msra.gmra.mxu1 %vm493_vm0, %v2839_v5  ;;  %1159 = vmatprep.subr.mxu1 %v2265_v1 }
 0x160   : > { %v2279_v10 = vpop.eup %2278  ;;  %1160 = vmatpush1.msra.mxu1 %v2263_v63  ;;  %975 = vmatprep.mubr.f32.mxu1 %v2552_v0 }
 0x161   : > { %v2281_v13 = vpop.eup %2280  ;;  %1161 = vmatprep.subr.mxu1 %v2275_v8  ;;  %2089 = vmatmul.mubr.msk.f32.vlgmr.msra.gmra.mxu0 %vm493_vm0, %v2798_v38 }
 0x162   : > { %v2283_v14 = vpop.eup %2282  ;;  %1162 = vmatpush1.msra.mxu1 %v2261_v62  ;;  %1388 = vmatpush1.msra.mxu0 %v2277_v9 }
 0x163   : > { %2054 = vmatmul.mubr.msk.f32.gmra.mxu1 %vm493_vm0, %v2847_v11  ;;  %1526 = vmatprep.subr.mxu1 %v2283_v14  ;;  %v2285_v21 = vpop.eup %2284 }
 0x164   : > { %981 = vmatprep.mubr.f32.mxu1 %v2552_v0  ;;  %1389 = vmatprep.subr.mxu0 %v2281_v13  ;;  %v2287_v22 = vpop.eup %2286 }
 0x165   : > { %1390 = vmatpush1.msra.mxu0 %v2279_v10  ;;  %1340 = vmatprep.mubr.f32.mxu0 %v2552_v0  ;;  %v2289_v23 = vpop.eup %2288 }
 0x166   : > { %2090 = vmatmul.mubr.msk.f32.gmra.mxu0 %vm493_vm0, %v2807_v43  ;;  %v2291_v24 = vpop.eup %2290 }
 0x167   : > { %2055 = vmatmul.mubr.msk.f32.gmra.mxu1 %vm493_vm0, %v2854_v15  ;;  %1346 = vmatprep.mubr.f32.mxu0 %v2552_v0  ;;  %v2293_v25 = vpop.eup %2292 }
 0x168   : > { %987 = vmatprep.mubr.f32.mxu1 %v2552_v0  ;;  %v2295_v26 = vpop.eup %2294 }
 0x169   : > { %v2297_v27 = vpop.eup %2296 }
 0x16a   : > { %2091 = vmatmul.mubr.msk.f32.gmra.mxu0 %vm493_vm0, %v2814_v50 }
 0x16b   : > { %2056 = vmatmul.mubr.msk.f32.gmra.mxu1 %vm493_vm0, %v2863_v17  ;;  %1352 = vmatprep.mubr.f32.mxu0 %v2552_v0 }
 0x16c   : > { %993 = vmatprep.mubr.f32.mxu1 %v2552_v0 }
 0x16e   : > { %2092 = vmatmul.mubr.msk.f32.gmra.mxu0 %vm493_vm0, %v2819_v54 }
 0x16f   : > { %2057 = vmatmul.mubr.msk.f32.gmra.mxu1 %vm493_vm0, %v2874_v19  ;;  %1423 = vmatprep.mubr.f32.mxu0 %v2552_v0 }
 0x170   : > { %999 = vmatprep.mubr.f32.mxu1 %v2552_v0 }
 0x172   : > { %2093 = vmatmul.mubr.msk.f32.vlgmr.msra.gmra.mxu0 %vm493_vm0, %v2839_v5 }
 0x173   : > { %2058 = vmatmul.mubr.msk.f32.gmra.mxu1 %vm493_vm0, %v785_v20  ;;  %1429 = vmatprep.mubr.f32.mxu0 %v2552_v0 }
 0x174   : > { %1195 = vmatprep.mubr.f32.mxu1 %v2552_v0 }
 0x176   : > { %2094 = vmatmul.mubr.msk.f32.gmra.mxu0 %vm493_vm0, %v2847_v11 }
 0x177   : > { %2063 = vmatmul.mubr.msk.f32.vlgmr.msra.gmra.mxu1 %vm493_vm0, %v2839_v5  ;;  %1435 = vmatprep.mubr.f32.mxu0 %v2552_v0 }
 0x178   : > { %1527 = vmatpush1.msra.mxu1 %v2287_v22  ;;  %1201 = vmatprep.mubr.f32.mxu1 %v2552_v0 }
 0x179   : > { %1528 = vmatprep.subr.mxu1 %v2285_v21 }
 0x17a   : > { %1529 = vmatpush1.msra.mxu1 %v2291_v24  ;;  %2095 = vmatmul.mubr.msk.f32.gmra.mxu0 %vm493_vm0, %v2854_v15 }
 0x17b   : > { %2064 = vmatmul.mubr.msk.f32.gmra.mxu1 %vm493_vm0, %v2847_v11  ;;  %1615 = vmatprep.subr.mxu1 %v2289_v23 }
 0x17c   : > { %1207 = vmatprep.mubr.f32.mxu1 %v2552_v0  ;;  %1441 = vmatprep.mubr.f32.mxu0 %v2552_v0 }
 0x17e   : > { %2096 = vmatmul.mubr.msk.f32.gmra.mxu0 %vm493_vm0, %v2863_v17 }
 0x17f   : > { %2065 = vmatmul.mubr.msk.f32.gmra.mxu1 %vm493_vm0, %v2854_v15  ;;  %1447 = vmatprep.mubr.f32.mxu0 %v2552_v0 }
 0x180   : > { %1213 = vmatprep.mubr.f32.mxu1 %v2552_v0 }
 0x182   : > { %2097 = vmatmul.mubr.msk.f32.gmra.mxu0 %vm493_vm0, %v2874_v19 }
 0x183   : > { %2066 = vmatmul.mubr.msk.f32.gmra.mxu1 %vm493_vm0, %v2863_v17  ;;  %1453 = vmatprep.mubr.f32.mxu0 %v2552_v0 }
 0x184   : > { %1219 = vmatprep.mubr.f32.mxu1 %v2552_v0 }
 0x186   : > { %2098 = vmatmul.mubr.msk.f32.gmra.mxu0 %vm493_vm0, %v785_v20 }
 0x187   : > { %2067 = vmatmul.mubr.msk.f32.gmra.mxu1 %vm493_vm0, %v2874_v19 }
 0x188   : > { %1225 = vmatprep.mubr.f32.mxu1 %v2552_v0 }
 0x18b   : > { %2068 = vmatmul.mubr.msk.f32.gmra.mxu1 %vm493_vm0, %v785_v20 }
 0x18c   : > { %1562 = vmatprep.mubr.f32.mxu1 %v2552_v0 }
 0x18f   : > { %2119 = vmatmul.mubr.msk.f32.vlgmr.msra.gmra.mxu1 %vm493_vm0, %v2798_v38 }
 0x190   : > { %1616 = vmatpush1.msra.mxu1 %v2293_v25  ;;  %1568 = vmatprep.mubr.f32.mxu1 %v2552_v0 }
 0x191   : > { %1617 = vmatprep.subr.mxu1 %v2295_v26 }
 0x192   : > { %1618 = vmatpush1.msra.mxu1 %v2297_v27 }
 0x193   : > { %2120 = vmatmul.mubr.msk.f32.gmra.mxu1 %vm493_vm0, %v2807_v43 }
 0x194   : > { %1574 = vmatprep.mubr.f32.mxu1 %v2552_v0 }
 0x197   : > { %2121 = vmatmul.mubr.msk.f32.gmra.mxu1 %vm493_vm0, %v2814_v50 }
 0x198   : > { %1580 = vmatprep.mubr.f32.mxu1 %v2552_v0 }
 0x19b   : > { %2122 = vmatmul.mubr.msk.f32.gmra.mxu1 %vm493_vm0, %v2819_v54 }
 0x19c   : > { %1651 = vmatprep.mubr.f32.mxu1 %v2552_v0 }
 0x19f   : > { %2123 = vmatmul.mubr.msk.f32.vlgmr.msra.gmra.mxu1 %vm493_vm0, %v2839_v5 }
 0x1a0   : > { %1657 = vmatprep.mubr.f32.mxu1 %v2552_v0 }
 0x1a3   : > { %2124 = vmatmul.mubr.msk.f32.gmra.mxu1 %vm493_vm0, %v2847_v11 }
 0x1a4   : > { %1663 = vmatprep.mubr.f32.mxu1 %v2552_v0 }
 0x1a7   : > { %2125 = vmatmul.mubr.msk.f32.gmra.mxu1 %vm493_vm0, %v2854_v15 }
 0x1a8   : > { %1669 = vmatprep.mubr.f32.mxu1 %v2552_v0 }
 0x1ab   : > { %2126 = vmatmul.mubr.msk.f32.gmra.mxu1 %vm493_vm0, %v2863_v17 }
 0x1ac   : > { %1675 = vmatprep.mubr.f32.mxu1 %v2552_v0 }
 0x1af   : > { %2127 = vmatmul.mubr.msk.f32.gmra.mxu1 %vm493_vm0, %v2874_v19 }
 0x1b0   : > { %1681 = vmatprep.mubr.f32.mxu1 %v2552_v0 }
 0x1b3   : > { %2128 = vmatmul.mubr.msk.f32.gmra.mxu1 %vm493_vm0, %v785_v20 }
 0x1ff   : > { %v864_v0 = vpop.f32.mrf.mxu0 }
 0x200   : > { %1019 = vst.msk [vmem:[%s2954_s25] sm:$0xff] %vm1018_vm1, %v864_v0 }
 0x201   : > { %v866_v28 = vpop.f32.mrf.mxu0 }
 0x202   : > { %1024 = vst.msk [vmem:[%s2959_s12] sm:$0xff] %vm1018_vm1, %v866_v28 }
 0x203   : > { %v870_v29 = vpop.f32.mrf.mxu0 }
 0x204   : > { %1020 = vst.msk [vmem:[%s2954_s25 + $0x8] sm:$0xff] %vm1018_vm1, %v870_v29 }
 0x205   : > { %v872_v30 = vpop.f32.mrf.mxu0 }
 0x206   : > { %1025 = vst.msk [vmem:[%s2959_s12 + $0x8] sm:$0xff] %vm1018_vm1, %v872_v30 }
 0x207   : > { %v876_v31 = vpop.f32.mrf.mxu0 }
 0x208   : > { %1021 = vst.msk [vmem:[%s2954_s25 + $0x10] sm:$0xff] %vm1018_vm1, %v876_v31 }
 0x209   : > { %v878_v32 = vpop.f32.mrf.mxu0 }
 0x20a   : > { %1026 = vst.msk [vmem:[%s2959_s12 + $0x10] sm:$0xff] %vm1018_vm1, %v878_v32 }
 0x20b   : > { %v882_v33 = vpop.f32.mrf.mxu0 }
 0x20c   : > { %1023 = vst.msk [vmem:[%s2954_s25 + $0x18] sm:$0xf] %vm1022_vm2, %v882_v33 }
 0x20d   : > { %v884_v34 = vpop.f32.mrf.mxu0 }
 0x20e   : > { %1027 = vst.msk [vmem:[%s2959_s12 + $0x18] sm:$0xf] %vm1022_vm2, %v884_v34 }
 0x20f   : > { %v1108_v35 = vpop.f32.mrf.mxu0 }
 0x210   : > { %2069 = vst.msk [vmem:[%s2954_s25 + $0x20] sm:$0xff] %vm1018_vm1, %v1108_v35 }
 0x211   : > { %v1110_v36 = vpop.f32.mrf.mxu0 }
 0x212   : > { %2073 = vst.msk [vmem:[%s2959_s12 + $0x20] sm:$0xff] %vm1018_vm1, %v1110_v36 }
 0x213   : > { %v1114_v37 = vpop.f32.mrf.mxu0 }
 0x214   : > { %2070 = vst.msk [vmem:[%s2954_s25 + $0x28] sm:$0xff] %vm1018_vm1, %v1114_v37 }
 0x215   : > { %v1116_v38 = vpop.f32.mrf.mxu0 }
 0x216   : > { %2074 = vst.msk [vmem:[%s2959_s12 + $0x28] sm:$0xff] %vm1018_vm1, %v1116_v38 }
 0x217   : > { %v1120_v39 = vpop.f32.mrf.mxu0 }
 0x218   : > { %2071 = vst.msk [vmem:[%s2954_s25 + $0x30] sm:$0xff] %vm1018_vm1, %v1120_v39 }
 0x219   : > { %v1122_v40 = vpop.f32.mrf.mxu0 }
 0x21a   : > { %2075 = vst.msk [vmem:[%s2959_s12 + $0x30] sm:$0xff] %vm1018_vm1, %v1122_v40 }
 0x21b   : > { %v1126_v41 = vpop.f32.mrf.mxu0 }
 0x21c   : > { %2072 = vst.msk [vmem:[%s2954_s25 + $0x38] sm:$0xf] %vm1022_vm2, %v1126_v41 }
 0x21d   : > { %v1128_v42 = vpop.f32.mrf.mxu0 }
 0x21e   : > { %2076 = vst.msk [vmem:[%s2959_s12 + $0x38] sm:$0xf] %vm1022_vm2, %v1128_v42 }
 0x21f   : > { %v971_v43 = vpop.f32.mrf.mxu1 }
 0x220   : > { %2298 = vtanh.f32 %v971_v43 }
 0x221   : > { %v973_v44 = vpop.f32.mrf.mxu1  ;;  %v1336_v45 = vpop.f32.mrf.mxu0 }
 0x222   : > { %2300 = vtanh.f32 %v973_v44  ;;  %2099 = vst.msk [vmem:[%s2954_s25 + $0x40] sm:$0xff] %vm1018_vm1, %v1336_v45 }
 0x223   : > { %v977_v46 = vpop.f32.mrf.mxu1  ;;  %v1338_v47 = vpop.f32.mrf.mxu0 }
 0x224   : > { %2302 = vtanh.f32 %v977_v46  ;;  %2103 = vst.msk [vmem:[%s2959_s12 + $0x40] sm:$0xff] %vm1018_vm1, %v1338_v47 }
 0x225   : > { %v979_v48 = vpop.f32.mrf.mxu1 }
 0x226   : > { %2304 = vtanh.f32 %v979_v48  ;;  %v1342_v49 = vpop.f32.mrf.mxu0 }
 0x227   : > { %v983_v50 = vpop.f32.mrf.mxu1  ;;  %2100 = vst.msk [vmem:[%s2954_s25 + $0x48] sm:$0xff] %vm1018_vm1, %v1342_v49 }
 0x228   : > { %2306 = vtanh.f32 %v983_v50  ;;  %v1344_v51 = vpop.f32.mrf.mxu0 }
 0x229   : > { %v985_v52 = vpop.f32.mrf.mxu1  ;;  %2104 = vst.msk [vmem:[%s2959_s12 + $0x48] sm:$0xff] %vm1018_vm1, %v1344_v51 }
 0x22a   : > { %2308 = vtanh.f32 %v985_v52  ;;  %v1348_v53 = vpop.f32.mrf.mxu0 }
 0x22b   : > { %v989_v54 = vpop.f32.mrf.mxu1  ;;  %2101 = vst.msk [vmem:[%s2954_s25 + $0x50] sm:$0xff] %vm1018_vm1, %v1348_v53 }
 0x22c   : > { %2310 = vtanh.f32 %v989_v54  ;;  %v1350_v55 = vpop.f32.mrf.mxu0 }
 0x22d   : > { %v2299_v56 = vpop.eup %2298  ;;  %v991_v57 = vpop.f32.mrf.mxu1  ;;  %2105 = vst.msk [vmem:[%s2959_s12 + $0x50] sm:$0xff] %vm1018_vm1, %v1350_v55 }
 0x22e   : > { %1029 = vst.msk [vmem:[%s3008_s18] sm:$0xff] %vm1028_vm3, %v2299_v56  ;;  %2312 = vtanh.f32 %v991_v57  ;;  %v1354_v58 = vpop.f32.mrf.mxu0 }
 0x22f   : > { %v2301_v59 = vpop.eup %2300  ;;  %v995_v60 = vpop.f32.mrf.mxu1  ;;  %2102 = vst.msk [vmem:[%s2954_s25 + $0x58] sm:$0xf] %vm1022_vm2, %v1354_v58 }
 0x230   : > { %1033 = vst.msk [vmem:[%s3016_s30] sm:$0xff] %vm1028_vm3, %v2301_v59  ;;  %2314 = vtanh.f32 %v995_v60  ;;  %v1356_v61 = vpop.f32.mrf.mxu0 }
 0x231   : > { %v2303_v62 = vpop.eup %2302  ;;  %v997_v63 = vpop.f32.mrf.mxu1  ;;  %2106 = vst.msk [vmem:[%s2959_s12 + $0x58] sm:$0xf] %vm1022_vm2, %v1356_v61 }
 0x232   : > { %1030 = vst.msk [vmem:[%s3008_s18 + $0x8] sm:$0xff] %vm1028_vm3, %v2303_v62  ;;  %2316 = vtanh.f32 %v997_v63  ;;  %v1425_v1 = vpop.f32.mrf.mxu0 }
 0x233   : > { %v2305_v2 = vpop.eup %2304  ;;  %v1001_v3 = vpop.f32.mrf.mxu1 }
 0x234   : > { %1034 = vst.msk [vmem:[%s3016_s30 + $0x8] sm:$0xff] %vm1028_vm3, %v2305_v2  ;;  %2318 = vtanh.f32 %v1001_v3  ;;  %v1427_v4 = vpop.f32.mrf.mxu0 }
 0x235   : > { %v2307_v5 = vpop.eup %2306  ;;  %v1003_v6 = vpop.f32.mrf.mxu1 }
 0x236   : > { %1032 = vst.msk [vmem:[%s3008_s18 + $0x10] sm:$0x1] %vm1031_vm4, %v2307_v5  ;;  %2320 = vtanh.f32 %v1003_v6  ;;  %v1431_v7 = vpop.f32.mrf.mxu0 }
 0x237   : > { %v2309_v8 = vpop.eup %2308  ;;  %v1197_v9 = vpop.f32.mrf.mxu1  ;;  %2322 = vtanh.f32 %v1425_v1 }
 0x238   : > { %1035 = vst.msk [vmem:[%s3016_s30 + $0x10] sm:$0x1] %vm1031_vm4, %v2309_v8  ;;  %2324 = vtanh.f32 %v1197_v9  ;;  %v1433_v10 = vpop.f32.mrf.mxu0 }
 0x239   : > { %v2311_v11 = vpop.eup %2310  ;;  %v1199_v12 = vpop.f32.mrf.mxu1  ;;  %2326 = vtanh.f32 %v1427_v4 }
 0x23a   : > { %1036 = vst.msk [vmem:[%s3038_s15] sm:$0xff] %vm1028_vm3, %v2311_v11  ;;  %2328 = vtanh.f32 %v1199_v12  ;;  %v1437_v13 = vpop.f32.mrf.mxu0 }
 0x23b   : > { %v2313_v14 = vpop.eup %2312  ;;  %v1203_v15 = vpop.f32.mrf.mxu1  ;;  %2330 = vtanh.f32 %v1431_v7 }
 0x23c   : > { %1039 = vst.msk [vmem:[%s3046_s24] sm:$0xff] %vm1028_vm3, %v2313_v14  ;;  %2332 = vtanh.f32 %v1203_v15  ;;  %v1439_v16 = vpop.f32.mrf.mxu0 }
 0x23d   : > { %v2315_v17 = vpop.eup %2314  ;;  %v1205_v18 = vpop.f32.mrf.mxu1  ;;  %2334 = vtanh.f32 %v1433_v10 }
 0x23e   : > { %1037 = vst.msk [vmem:[%s3038_s15 + $0x8] sm:$0xff] %vm1028_vm3, %v2315_v17  ;;  %2336 = vtanh.f32 %v1205_v18  ;;  %v1443_v19 = vpop.f32.mrf.mxu0 }
 0x23f   : > { %v2317_v20 = vpop.eup %2316  ;;  %v1209_v21 = vpop.f32.mrf.mxu1  ;;  %2338 = vtanh.f32 %v1437_v13 }
 0x240   : > { %1040 = vst.msk [vmem:[%s3046_s24 + $0x8] sm:$0xff] %vm1028_vm3, %v2317_v20  ;;  %2340 = vtanh.f32 %v1209_v21  ;;  %v1445_v22 = vpop.f32.mrf.mxu0 }
 0x241   : > { %v2319_v23 = vpop.eup %2318  ;;  %v1211_v24 = vpop.f32.mrf.mxu1  ;;  %2342 = vtanh.f32 %v1439_v16 }
 0x242   : > { %1038 = vst.msk [vmem:[%s3038_s15 + $0x10] sm:$0x1] %vm1031_vm4, %v2319_v23  ;;  %2344 = vtanh.f32 %v1211_v24  ;;  %v1449_v25 = vpop.f32.mrf.mxu0 }
 0x243   : > { %v2321_v26 = vpop.eup %2320  ;;  %v1215_v27 = vpop.f32.mrf.mxu1  ;;  %2346 = vtanh.f32 %v1443_v19 }
 0x244   : > { %v2323_v0 = vpop.eup %2322  ;;  %1041 = vst.msk [vmem:[%s3046_s24 + $0x10] sm:$0x1] %vm1031_vm4, %v2321_v26  ;;  %2348 = vtanh.f32 %v1215_v27  ;;  %v1451_v28 = vpop.f32.mrf.mxu0 }
 0x245   : > { %v2325_v29 = vpop.eup %2324  ;;  %v1217_v30 = vpop.f32.mrf.mxu1  ;;  %2350 = vtanh.f32 %v1445_v22  ;;  %2107 = vst.msk [vmem:[%s3008_s18 + $0x30] sm:$0xff] %vm1028_vm3, %v2323_v0 }
 0x246   : > { %v2327_v31 = vpop.eup %2326  ;;  %2077 = vst.msk [vmem:[%s3008_s18 + $0x18] sm:$0xff] %vm1028_vm3, %v2325_v29  ;;  %2352 = vtanh.f32 %v1217_v30  ;;  %v1455_v32 = vpop.f32.mrf.mxu0 }
 0x247   : > { %v2329_v33 = vpop.eup %2328  ;;  %v1221_v34 = vpop.f32.mrf.mxu1  ;;  %2354 = vtanh.f32 %v1449_v25  ;;  %2110 = vst.msk [vmem:[%s3016_s30 + $0x30] sm:$0xff] %vm1028_vm3, %v2327_v31 }
 0x248   : > { %v2331_v35 = vpop.eup %2330  ;;  %2080 = vst.msk [vmem:[%s3016_s30 + $0x18] sm:$0xff] %vm1028_vm3, %v2329_v33  ;;  %2356 = vtanh.f32 %v1221_v34  ;;  %v1457_v39 = vpop.f32.mrf.mxu0 }
 0x249   : > { %v2333_v36 = vpop.eup %2332  ;;  %v1223_v37 = vpop.f32.mrf.mxu1  ;;  %2358 = vtanh.f32 %v1451_v28  ;;  %2108 = vst.msk [vmem:[%s3008_s18 + $0x38] sm:$0xff] %vm1028_vm3, %v2331_v35 }
 0x24a   : > { %v2335_v38 = vpop.eup %2334  ;;  %2078 = vst.msk [vmem:[%s3008_s18 + $0x20] sm:$0xff] %vm1028_vm3, %v2333_v36  ;;  %2360 = vtanh.f32 %v1223_v37 }
 0x24b   : > { %v2337_v40 = vpop.eup %2336  ;;  %v1227_v41 = vpop.f32.mrf.mxu1  ;;  %2362 = vtanh.f32 %v1455_v32  ;;  %2111 = vst.msk [vmem:[%s3016_s30 + $0x38] sm:$0xff] %vm1028_vm3, %v2335_v38 }
 0x24c   : > { %v2339_v42 = vpop.eup %2338  ;;  %2081 = vst.msk [vmem:[%s3016_s30 + $0x20] sm:$0xff] %vm1028_vm3, %v2337_v40  ;;  %2364 = vtanh.f32 %v1227_v41 }
 0x24d   : > { %v2341_v43 = vpop.eup %2340  ;;  %v1229_v44 = vpop.f32.mrf.mxu1  ;;  %2366 = vtanh.f32 %v1457_v39  ;;  %2109 = vst.msk [vmem:[%s3008_s18 + $0x40] sm:$0x1] %vm1031_vm4, %v2339_v42 }
 0x24e   : > { %v2343_v45 = vpop.eup %2342  ;;  %2079 = vst.msk [vmem:[%s3008_s18 + $0x28] sm:$0x1] %vm1031_vm4, %v2341_v43  ;;  %2368 = vtanh.f32 %v1229_v44 }
 0x24f   : > { %v2345_v46 = vpop.eup %2344  ;;  %v1564_v47 = vpop.f32.mrf.mxu1  ;;  %2112 = vst.msk [vmem:[%s3016_s30 + $0x40] sm:$0x1] %vm1031_vm4, %v2343_v45 }
 0x250   : > { %v2347_v48 = vpop.eup %2346  ;;  %2082 = vst.msk [vmem:[%s3016_s30 + $0x28] sm:$0x1] %vm1031_vm4, %v2345_v46 }
 0x251   : > { %2129 = vst.msk [vmem:[%s2954_s25 + $0x60] sm:$0xff] %vm1018_vm1, %v1564_v47  ;;  %v2349_v49 = vpop.eup %2348  ;;  %v1566_v50 = vpop.f32.mrf.mxu1 }
 0x252   : > { %v2351_v51 = vpop.eup %2350  ;;  %2083 = vst.msk [vmem:[%s3038_s15 + $0x18] sm:$0xff] %vm1028_vm3, %v2349_v49  ;;  %2113 = vst.msk [vmem:[%s3038_s15 + $0x30] sm:$0xff] %vm1028_vm3, %v2347_v48 }
 0x253   : > { %2133 = vst.msk [vmem:[%s2959_s12 + $0x60] sm:$0xff] %vm1018_vm1, %v1566_v50  ;;  %v2353_v52 = vpop.eup %2352  ;;  %v1570_v53 = vpop.f32.mrf.mxu1 }
 0x254   : > { %v2355_v54 = vpop.eup %2354  ;;  %2086 = vst.msk [vmem:[%s3046_s24 + $0x18] sm:$0xff] %vm1028_vm3, %v2353_v52  ;;  %2116 = vst.msk [vmem:[%s3046_s24 + $0x30] sm:$0xff] %vm1028_vm3, %v2351_v51 }
 0x255   : > { %2130 = vst.msk [vmem:[%s2954_s25 + $0x68] sm:$0xff] %vm1018_vm1, %v1570_v53  ;;  %v2357_v55 = vpop.eup %2356  ;;  %v1572_v56 = vpop.f32.mrf.mxu1 }
 0x256   : > { %v2359_v57 = vpop.eup %2358  ;;  %2084 = vst.msk [vmem:[%s3038_s15 + $0x20] sm:$0xff] %vm1028_vm3, %v2357_v55  ;;  %2114 = vst.msk [vmem:[%s3038_s15 + $0x38] sm:$0xff] %vm1028_vm3, %v2355_v54 }
 0x257   : > { %2134 = vst.msk [vmem:[%s2959_s12 + $0x68] sm:$0xff] %vm1018_vm1, %v1572_v56  ;;  %v2361_v58 = vpop.eup %2360  ;;  %v1576_v59 = vpop.f32.mrf.mxu1 }
 0x258   : > { %v2363_v60 = vpop.eup %2362  ;;  %2087 = vst.msk [vmem:[%s3046_s24 + $0x20] sm:$0xff] %vm1028_vm3, %v2361_v58  ;;  %2117 = vst.msk [vmem:[%s3046_s24 + $0x38] sm:$0xff] %vm1028_vm3, %v2359_v57 }
 0x259   : > { %2131 = vst.msk [vmem:[%s2954_s25 + $0x70] sm:$0xff] %vm1018_vm1, %v1576_v59  ;;  %v2365_v61 = vpop.eup %2364  ;;  %v1578_v62 = vpop.f32.mrf.mxu1 }
 0x25a   : > { %v2367_v63 = vpop.eup %2366  ;;  %2085 = vst.msk [vmem:[%s3038_s15 + $0x28] sm:$0x1] %vm1031_vm4, %v2365_v61  ;;  %2115 = vst.msk [vmem:[%s3038_s15 + $0x40] sm:$0x1] %vm1031_vm4, %v2363_v60 }
 0x25b   : > { %2135 = vst.msk [vmem:[%s2959_s12 + $0x70] sm:$0xff] %vm1018_vm1, %v1578_v62  ;;  %v2369_v1 = vpop.eup %2368  ;;  %v1582_v2 = vpop.f32.mrf.mxu1 }
 0x25c   : > { %2088 = vst.msk [vmem:[%s3046_s24 + $0x28] sm:$0x1] %vm1031_vm4, %v2369_v1  ;;  %2118 = vst.msk [vmem:[%s3046_s24 + $0x40] sm:$0x1] %vm1031_vm4, %v2367_v63 }
 0x25d   : > { %2132 = vst.msk [vmem:[%s2954_s25 + $0x78] sm:$0xf] %vm1022_vm2, %v1582_v2  ;;  %v1584_v3 = vpop.f32.mrf.mxu1 }
 0x25e   : > { %2136 = vst.msk [vmem:[%s2959_s12 + $0x78] sm:$0xf] %vm1022_vm2, %v1584_v3 }
 0x25f   : > { %v1653_v4 = vpop.f32.mrf.mxu1 }
 0x260   : > { %2370 = vtanh.f32 %v1653_v4 }
 0x261   : > { %v1655_v5 = vpop.f32.mrf.mxu1 }
 0x262   : > { %2372 = vtanh.f32 %v1655_v5 }
 0x263   : > { %v1659_v6 = vpop.f32.mrf.mxu1 }
 0x264   : > { %2374 = vtanh.f32 %v1659_v6 }
 0x265   : > { %v1661_v7 = vpop.f32.mrf.mxu1 }
 0x266   : > { %2376 = vtanh.f32 %v1661_v7 }
 0x267   : > { %v1665_v8 = vpop.f32.mrf.mxu1 }
 0x268   : > { %2378 = vtanh.f32 %v1665_v8 }
 0x269   : > { %v1667_v9 = vpop.f32.mrf.mxu1 }
 0x26a   : > { %2380 = vtanh.f32 %v1667_v9 }
 0x26b   : > { %v1671_v10 = vpop.f32.mrf.mxu1 }
 0x26c   : > { %2382 = vtanh.f32 %v1671_v10 }
 0x26d   : > { %v2371_v11 = vpop.eup %2370  ;;  %v1673_v12 = vpop.f32.mrf.mxu1 }
 0x26e   : > { %2137 = vst.msk [vmem:[%s3008_s18 + $0x48] sm:$0xff] %vm1028_vm3, %v2371_v11  ;;  %2384 = vtanh.f32 %v1673_v12 }
 0x26f   : > { %v2373_v13 = vpop.eup %2372  ;;  %v1677_v14 = vpop.f32.mrf.mxu1 }
 0x270   : > { %2140 = vst.msk [vmem:[%s3016_s30 + $0x48] sm:$0xff] %vm1028_vm3, %v2373_v13  ;;  %2386 = vtanh.f32 %v1677_v14 }
 0x271   : > { %v2375_v15 = vpop.eup %2374  ;;  %v1679_v16 = vpop.f32.mrf.mxu1 }
 0x272   : > { %2138 = vst.msk [vmem:[%s3008_s18 + $0x50] sm:$0xff] %vm1028_vm3, %v2375_v15  ;;  %2388 = vtanh.f32 %v1679_v16 }
 0x273   : > { %v2377_v17 = vpop.eup %2376  ;;  %v1683_v18 = vpop.f32.mrf.mxu1 }
 0x274   : > { %2141 = vst.msk [vmem:[%s3016_s30 + $0x50] sm:$0xff] %vm1028_vm3, %v2377_v17  ;;  %2390 = vtanh.f32 %v1683_v18 }
 0x275   : > { %v2379_v19 = vpop.eup %2378  ;;  %v1685_v20 = vpop.f32.mrf.mxu1 }
 0x276   : > { %2139 = vst.msk [vmem:[%s3008_s18 + $0x58] sm:$0x1] %vm1031_vm4, %v2379_v19  ;;  %2392 = vtanh.f32 %v1685_v20 }
 0x277   : > { %v2381_v21 = vpop.eup %2380 }
 0x278   : > { %2142 = vst.msk [vmem:[%s3016_s30 + $0x58] sm:$0x1] %vm1031_vm4, %v2381_v21 }
 0x279   : > { %v2383_v22 = vpop.eup %2382 }
 0x27a   : > { %2143 = vst.msk [vmem:[%s3038_s15 + $0x48] sm:$0xff] %vm1028_vm3, %v2383_v22 }
 0x27b   : > { %v2385_v23 = vpop.eup %2384 }
 0x27c   : > { %2146 = vst.msk [vmem:[%s3046_s24 + $0x48] sm:$0xff] %vm1028_vm3, %v2385_v23 }
 0x27d   : > { %v2387_v24 = vpop.eup %2386 }
 0x27e   : > { %2144 = vst.msk [vmem:[%s3038_s15 + $0x50] sm:$0xff] %vm1028_vm3, %v2387_v24 }
 0x27f   : > { %v2389_v25 = vpop.eup %2388 }
 0x280   : > { %2147 = vst.msk [vmem:[%s3046_s24 + $0x50] sm:$0xff] %vm1028_vm3, %v2389_v25 }
 0x281   : > { %v2391_v26 = vpop.eup %2390 }
 0x282   : > { %2145 = vst.msk [vmem:[%s3038_s15 + $0x58] sm:$0x1] %vm1031_vm4, %v2391_v26 }
 0x283   : > { %v2393_v27 = vpop.eup %2392 }
 0x284   : > { %2148 = vst.msk [vmem:[%s3046_s24 + $0x58] sm:$0x1] %vm1031_vm4, %v2393_v27 }
 0x285 PF: > { %p22_p3 = scmp.ge.s32.totalorder %s2671_s22, 4   ;;  %s3189_s30 = smov %s2534_s10 }
 0x286   : > { %s3190_s10 = smov %s2538_s11  ;;  %s3191_s11 = smov %s2692_s19 }
 0x287   : > { %s3192_s12 = smov %s2671_s22  ;;  %24 = sbr.rel (!%p22_p3) target bundleno = 5 (0x5), region = 166 }
 0x28c   :  { %1845 = vsyncpa [#allocation3], 1 }
 0x28d   :  { %1847 = vsyncpa [#allocation3 + $0x1], 1 }
 0x28e   :  { %1848 = vsyncpa [#allocation5], 1 }
 0x28f   :  { %1849 = vsyncpa [#allocation8], 1 }

</bundles_post_ra>
